<compile_context>
chip_gen: v6e
topology: v6e:2x2x1
jax: 0.10.0
libtpu: 0.0.40
codegen_flags: <defaults>
</compile_context>

<pallas_src>
import jax
import jax.numpy as jnp
from jax.experimental import pallas as pl
from jax.experimental.pallas import tpu as pltpu

# Model dimensions implied by the module.
SEQ = 8          # sequence length after reshape(-1, 8, 32)
IN_DIM = 32      # LSTM input size
HID = 10         # LSTM hidden size
HID_PAD = 16     # hidden size padded to a multiple of 8 sublanes
HEAD = 17        # head hidden size (Linear(80, 17))


def _sigmoid(x):
    # Numerically stable sigmoid as a single EUP tanh (avoids exp overflow and any
    # dependence on lax.logistic lowering inside the kernel).
    return 0.5 * (jnp.tanh(0.5 * x) + 1.0)


def _lstm_mlp_kernel(x_ref, wih_ref, whh_ref, bg_ref, wl1_ref, bl1_ref, wl2_ref,
                     bl2_ref, o_ref):
    """One batch tile (tm columns) of LSTM(32->10, 8 steps) + Linear/Sigmoid/Linear head.

    Layout: batch in lanes.
      x_ref  : (SEQ, IN_DIM, tm)
      wih_ref: (4*HID_PAD, IN_DIM)   whh_ref: (4*HID_PAD, HID_PAD)   bg_ref: (4*HID_PAD, 1)
      wl1_ref: (HEAD, SEQ*HID_PAD)   bl1_ref: (HEAD, 1)              wl2_ref: (HEAD, 1)
      bl2_ref: (1,) scalar in SMEM
      o_ref  : (1, tm)               lane-dense output row
    """
    tm = x_ref.shape[-1]

    wih = wih_ref[...]
    whh = whh_ref[...]
    bg = bg_ref[...]

    # Input projections for all timesteps: independent of the recurrent state, so they
    # are hoisted off the recurrence's critical path (8 independent MXU pushes).
    gx = [
        jnp.dot(wih, x_ref[t], preferred_element_type=jnp.float32) + bg
        for t in range(SEQ)
    ]

    # PyTorch nn.LSTM default initial state (forward never passes h0/c0): zeros.
    h = jnp.zeros((HID_PAD, tm), jnp.float32)
    c = jnp.zeros((HID_PAD, tm), jnp.float32)

    hs = []
    for t in range(SEQ):                                   # static unroll, SEQ == 8
        g = gx[t] + jnp.dot(whh, h, preferred_element_type=jnp.float32)
        # PyTorch gate order: i, f, g, o — each padded block is HID_PAD rows (8-aligned).
        i_g = _sigmoid(g[0 * HID_PAD:1 * HID_PAD, :])
        f_g = _sigmoid(g[1 * HID_PAD:2 * HID_PAD, :])
        g_g = jnp.tanh(g[2 * HID_PAD:3 * HID_PAD, :])
        o_g = _sigmoid(g[3 * HID_PAD:4 * HID_PAD, :])
        c = f_g * c + i_g * g_g
        h = o_g * jnp.tanh(c)
        hs.append(h)

    # (SEQ*HID_PAD, tm) = (128, tm); column n holds [h_0(n), ..., h_7(n)] (time-major),
    # matching permute(1,0,2).reshape(-1, 80) up to the zero-padded rows.
    feat = jnp.concatenate(hs, axis=0)

    # Head layer 1 on the MXU (17x128 @ 128xtm — lane-dense result), then sigmoid.
    z = jnp.dot(wl1_ref[...], feat, preferred_element_type=jnp.float32) + bl1_ref[...]
    z = _sigmoid(z)                                        # (HEAD, tm)

    # Head layer 2 Linear(17 -> 1): VPU multiply + sublane reduction (no 1-wide MXU
    # pass, no masked narrow store); scalar bias read from SMEM.
    y = jnp.sum(z * wl2_ref[...], axis=0, keepdims=True) + bl2_ref[0]   # (1, tm)
    o_ref[...] = y.astype(o_ref.dtype)


def _pad_gate_rows(w, h, hp):
    """(4h, ...) -> (4hp, ...): gate k's rows moved to [k*hp, k*hp+h); padding rows zero."""
    out = jnp.zeros((4 * hp,) + w.shape[1:], w.dtype)
    for k in range(4):
        out = out.at[k * hp:k * hp + h].set(w[k * h:(k + 1) * h])
    return out


def lstm_forward(x, params, *, tm=None):
    """Forward pass of the LSTM module.

    x: anything reshapeable to (N, SEQ, IN_DIM) — e.g. (N, 256).
    params: PyTorch-layout float tensors
      w_ih (40, 32), w_hh (40, 10), b_ih (40,), b_hh (40,),
      w_l1 (17, 80), b_l1 (17,), w_l2 (1, 17), b_l2 (1,)
    returns: (N, 1) float32
    """
    (w_ih, w_hh, b_ih, b_hh, w_l1, b_l1, w_l2, b_l2) = params

    x = jnp.asarray(x, jnp.float32).reshape(-1, SEQ, IN_DIM)
    n = x.shape[0]
    # Seq-major, features in sublanes, batch in lanes: (SEQ, IN_DIM, N).
    # (Wrapper-side layout plumbing; done once by XLA outside the kernel.)
    x_t = jnp.transpose(x, (1, 2, 0))

    f32 = jnp.float32
    # --- pad LSTM params: hidden 10 -> 16 rows per gate, zero padding ---
    wih_p = _pad_gate_rows(jnp.asarray(w_ih, f32), HID, HID_PAD)               # (64, 32)
    whh_p = jnp.zeros((4 * HID_PAD, HID_PAD), f32)
    whh_p = whh_p.at[:, :HID].set(_pad_gate_rows(jnp.asarray(w_hh, f32), HID, HID_PAD))
    bg_p = _pad_gate_rows(jnp.asarray(b_ih + b_hh, f32), HID, HID_PAD).reshape(4 * HID_PAD, 1)
    # --- head layer 1: remap 80 input columns onto the padded 128-feature layout ---
    wl1_p = jnp.zeros((HEAD, SEQ * HID_PAD), f32)
    w_l1 = jnp.asarray(w_l1, f32)
    for t in range(SEQ):
        wl1_p = wl1_p.at[:, t * HID_PAD:t * HID_PAD + HID].set(w_l1[:, t * HID:(t + 1) * HID])
    bl1_c = jnp.asarray(b_l1, f32).reshape(HEAD, 1)
    wl2_c = jnp.asarray(w_l2, f32).reshape(HEAD, 1)          # (1,17) -> (17,1) column
    bl2_s = jnp.asarray(b_l2, f32).reshape(1,)               # scalar, goes to SMEM

    # --- batch tile size: largest multiple of 128 that divides N; else one tile ---
    if tm is None:
        for cand in (1024, 512, 256, 128):
            if n % cand == 0:
                tm = cand
                break
        else:
            tm = n
    assert n % tm == 0, f"batch {n} must be divisible by tile {tm}"
    grid = (n // tm,)

    y_row = pl.pallas_call(
        _lstm_mlp_kernel,
        out_shape=jax.ShapeDtypeStruct((1, n), jnp.float32),
        grid_spec=pltpu.PrefetchScalarGridSpec(
            num_scalar_prefetch=0,
            grid=grid,
            in_specs=[
                pl.BlockSpec((SEQ, IN_DIM, tm), lambda i: (0, 0, i)),   # x: tiled over batch
                pl.BlockSpec((4 * HID_PAD, IN_DIM), lambda i: (0, 0)),  # W_ih (resident)
                pl.BlockSpec((4 * HID_PAD, HID_PAD), lambda i: (0, 0)), # W_hh
                pl.BlockSpec((4 * HID_PAD, 1), lambda i: (0, 0)),       # gate bias
                pl.BlockSpec((HEAD, SEQ * HID_PAD), lambda i: (0, 0)),  # head W1
                pl.BlockSpec((HEAD, 1), lambda i: (0, 0)),              # head b1
                pl.BlockSpec((HEAD, 1), lambda i: (0, 0)),              # head w2 (column)
                pl.BlockSpec(memory_space=pltpu.MemorySpace.SMEM),      # head b2 scalar
            ],
            out_specs=pl.BlockSpec((1, tm), lambda i: (0, i)),          # lane-dense output
        ),
        compiler_params=pltpu.CompilerParams(
            dimension_semantics=("parallel",),
        ),
    )(x_t, wih_p, whh_p, bg_p, wl1_p, bl1_c, wl2_c, bl2_s)

    return y_row.reshape(n, 1)


def init_params(key):
    """Deterministic params mimicking PyTorch default init (uniform +-1/sqrt(fan))."""
    ks = jax.random.split(key, 8)
    f32 = jnp.float32
    s_l = 1.0 / jnp.sqrt(jnp.asarray(HID, f32))
    w_ih = jax.random.uniform(ks[0], (4 * HID, IN_DIM), f32, -s_l, s_l)
    w_hh = jax.random.uniform(ks[1], (4 * HID, HID), f32, -s_l, s_l)
    b_ih = jax.random.uniform(ks[2], (4 * HID,), f32, -s_l, s_l)
    b_hh = jax.random.uniform(ks[3], (4 * HID,), f32, -s_l, s_l)
    s1 = 1.0 / jnp.sqrt(jnp.asarray(SEQ * HID, f32))
    w_l1 = jax.random.uniform(ks[4], (HEAD, SEQ * HID), f32, -s1, s1)
    b_l1 = jax.random.uniform(ks[5], (HEAD,), f32, -s1, s1)
    s2 = 1.0 / jnp.sqrt(jnp.asarray(HEAD, f32))
    w_l2 = jax.random.uniform(ks[6], (1, HEAD), f32, -s2, s2)
    b_l2 = jax.random.uniform(ks[7], (1,), f32, -s2, s2)
    return (w_ih, w_hh, b_ih, b_hh, w_l1, b_l1, w_l2, b_l2)


def reference_forward(x, params):
    """Plain-JAX reference of the PyTorch forward (same math, unpadded weights)."""
    (w_ih, w_hh, b_ih, b_hh, w_l1, b_l1, w_l2, b_l2) = params
    x = jnp.asarray(x, jnp.float32).reshape(-1, SEQ, IN_DIM)
    n = x.shape[0]
    xs = jnp.transpose(x, (1, 0, 2))                       # (SEQ, N, IN)
    h = jnp.zeros((n, HID), jnp.float32)
    c = jnp.zeros((n, HID), jnp.float32)
    outs = []
    for t in range(SEQ):
        g = xs[t] @ w_ih.T + b_ih + h @ w_hh.T + b_hh      # (N, 4H), gates i,f,g,o
        i_g = jax.nn.sigmoid(g[:, 0 * HID:1 * HID])
        f_g = jax.nn.sigmoid(g[:, 1 * HID:2 * HID])
        g_g = jnp.tanh(g[:, 2 * HID:3 * HID])
        o_g = jax.nn.sigmoid(g[:, 3 * HID:4 * HID])
        c = f_g * c + i_g * g_g
        h = o_g * jnp.tanh(c)
        outs.append(h)
    feat = jnp.transpose(jnp.stack(outs, axis=0), (1, 0, 2)).reshape(n, SEQ * HID)
    z = jax.nn.sigmoid(feat @ w_l1.T + b_l1)
    return z @ w_l2.T + b_l2                               # (N, 1)


if __name__ == "__main__":
    key = jax.random.PRNGKey(0)
    kx1, kx2, kp = jax.random.split(key, 3)
    params = init_params(kp)

    # Small shape consistent with the module: each sample has 8*32 = 256 features.
    n_small = 16
    x_small = jax.random.normal(kx1, (n_small, SEQ * IN_DIM), dtype=jnp.float32)
    y_small = jax.block_until_ready(lstm_forward(x_small, params))
    y_small_ref = reference_forward(x_small, params)
    assert y_small.shape == (n_small, 1)
    assert jnp.allclose(y_small, y_small_ref, atol=1e-4, rtol=1e-4), float(
        jnp.max(jnp.abs(y_small - y_small_ref)))

    # Larger batch exercising the tiled "parallel" grid path (2 batch tiles of 128).
    n_big = 256
    x_big = jax.random.normal(kx2, (n_big, SEQ * IN_DIM), dtype=jnp.float32)
    y_big = jax.block_until_ready(lstm_forward(x_big, params, tm=128))
    y_big_ref = reference_forward(x_big, params)
    assert jnp.allclose(y_big, y_big_ref, atol=1e-4, rtol=1e-4), float(
        jnp.max(jnp.abs(y_big - y_big_ref)))

    print("KERNEL_OK")
</pallas_src>

<mosaic_0001>
module attributes {stable_mosaic.version = 11 : i64} {
  func.func @_lstm_mlp_kernel(%arg0: i32, %arg1: memref<8x32x16xf32, #tpu.memory_space<vmem>>, %arg2: memref<64x32xf32, #tpu.memory_space<vmem>>, %arg3: memref<64x16xf32, #tpu.memory_space<vmem>>, %arg4: memref<64x1xf32, #tpu.memory_space<vmem>>, %arg5: memref<17x128xf32, #tpu.memory_space<vmem>>, %arg6: memref<17x1xf32, #tpu.memory_space<vmem>>, %arg7: memref<17x1xf32, #tpu.memory_space<vmem>>, %arg8: memref<1xf32, #tpu.memory_space<smem>>, %arg9: memref<1x16xf32, #tpu.memory_space<vmem>>) attributes {dimension_semantics = [#tpu.dimension_semantics<parallel>], iteration_bounds = array<i64: 1>, scalar_prefetch = 0 : i64, scratch_operands = 0 : i64, tpu.core_type = #tpu.core_type<tc>, window_params = [{transform_indices = @transform_0, window_bounds = array<i64: 8, 32, 16>}, {pipeline_mode = #tpu.pipeline_mode<synchronous>, transform_indices = @transform_1, window_bounds = array<i64: 64, 32>}, {pipeline_mode = #tpu.pipeline_mode<synchronous>, transform_indices = @transform_2, window_bounds = array<i64: 64, 16>}, {pipeline_mode = #tpu.pipeline_mode<synchronous>, transform_indices = @transform_3, window_bounds = array<i64: 64, 1>}, {pipeline_mode = #tpu.pipeline_mode<synchronous>, transform_indices = @transform_4, window_bounds = array<i64: 17, 128>}, {pipeline_mode = #tpu.pipeline_mode<synchronous>, transform_indices = @transform_5, window_bounds = array<i64: 17, 1>}, {pipeline_mode = #tpu.pipeline_mode<synchronous>, transform_indices = @transform_6, window_bounds = array<i64: 17, 1>}, {transform_indices = @transform_7, window_bounds = array<i64: 1>}, {transform_indices = @transform_8, window_bounds = array<i64: 1, 16>}]} {
    %c0 = arith.constant 0 : index
    %c0_0 = arith.constant 0 : index
    %0 = vector.load %arg2[%c0, %c0_0] : memref<64x32xf32, #tpu.memory_space<vmem>>, vector<64x32xf32>
    %c0_1 = arith.constant 0 : index
    %c0_2 = arith.constant 0 : index
    %1 = vector.load %arg3[%c0_1, %c0_2] : memref<64x16xf32, #tpu.memory_space<vmem>>, vector<64x16xf32>
    %c0_3 = arith.constant 0 : index
    %c0_4 = arith.constant 0 : index
    %2 = vector.load %arg4[%c0_3, %c0_4] : memref<64x1xf32, #tpu.memory_space<vmem>>, vector<64x1xf32>
    %c0_5 = arith.constant 0 : index
    %c0_6 = arith.constant 0 : index
    %c0_7 = arith.constant 0 : index
    %3 = vector.load %arg1[%c0_5, %c0_6, %c0_7] : memref<8x32x16xf32, #tpu.memory_space<vmem>>, vector<1x32x16xf32>
    %4 = vector.shape_cast %3 : vector<1x32x16xf32> to vector<32x16xf32>
    %cst = arith.constant dense<0.000000e+00> : vector<64x16xf32>
    %5 = tpu.matmul %0, %4, %cst {dimension_numbers = #tpu.dot_dimension_numbers<[1], [0], [0], [1], [0, 0, 1, 1], [], []>} : vector<64x32xf32>, vector<32x16xf32>, vector<64x16xf32> -> vector<64x16xf32>
    %6 = vector.broadcast %2 : vector<64x1xf32> to vector<64x16xf32>
    %7 = arith.addf %5, %6 : vector<64x16xf32>
    %c1 = arith.constant 1 : index
    %c0_8 = arith.constant 0 : index
    %c0_9 = arith.constant 0 : index
    %8 = vector.load %arg1[%c1, %c0_8, %c0_9] : memref<8x32x16xf32, #tpu.memory_space<vmem>>, vector<1x32x16xf32>
    %9 = vector.shape_cast %8 : vector<1x32x16xf32> to vector<32x16xf32>
    %cst_10 = arith.constant dense<0.000000e+00> : vector<64x16xf32>
    %10 = tpu.matmul %0, %9, %cst_10 {dimension_numbers = #tpu.dot_dimension_numbers<[1], [0], [0], [1], [0, 0, 1, 1], [], []>} : vector<64x32xf32>, vector<32x16xf32>, vector<64x16xf32> -> vector<64x16xf32>
    %11 = vector.broadcast %2 : vector<64x1xf32> to vector<64x16xf32>
    %12 = arith.addf %10, %11 : vector<64x16xf32>
    %c2 = arith.constant 2 : index
    %c0_11 = arith.constant 0 : index
    %c0_12 = arith.constant 0 : index
    %13 = vector.load %arg1[%c2, %c0_11, %c0_12] : memref<8x32x16xf32, #tpu.memory_space<vmem>>, vector<1x32x16xf32>
    %14 = vector.shape_cast %13 : vector<1x32x16xf32> to vector<32x16xf32>
    %cst_13 = arith.constant dense<0.000000e+00> : vector<64x16xf32>
    %15 = tpu.matmul %0, %14, %cst_13 {dimension_numbers = #tpu.dot_dimension_numbers<[1], [0], [0], [1], [0, 0, 1, 1], [], []>} : vector<64x32xf32>, vector<32x16xf32>, vector<64x16xf32> -> vector<64x16xf32>
    %16 = vector.broadcast %2 : vector<64x1xf32> to vector<64x16xf32>
    %17 = arith.addf %15, %16 : vector<64x16xf32>
    %c3 = arith.constant 3 : index
    %c0_14 = arith.constant 0 : index
    %c0_15 = arith.constant 0 : index
    %18 = vector.load %arg1[%c3, %c0_14, %c0_15] : memref<8x32x16xf32, #tpu.memory_space<vmem>>, vector<1x32x16xf32>
    %19 = vector.shape_cast %18 : vector<1x32x16xf32> to vector<32x16xf32>
    %cst_16 = arith.constant dense<0.000000e+00> : vector<64x16xf32>
    %20 = tpu.matmul %0, %19, %cst_16 {dimension_numbers = #tpu.dot_dimension_numbers<[1], [0], [0], [1], [0, 0, 1, 1], [], []>} : vector<64x32xf32>, vector<32x16xf32>, vector<64x16xf32> -> vector<64x16xf32>
    %21 = vector.broadcast %2 : vector<64x1xf32> to vector<64x16xf32>
    %22 = arith.addf %20, %21 : vector<64x16xf32>
    %c4 = arith.constant 4 : index
    %c0_17 = arith.constant 0 : index
    %c0_18 = arith.constant 0 : index
    %23 = vector.load %arg1[%c4, %c0_17, %c0_18] : memref<8x32x16xf32, #tpu.memory_space<vmem>>, vector<1x32x16xf32>
    %24 = vector.shape_cast %23 : vector<1x32x16xf32> to vector<32x16xf32>
    %cst_19 = arith.constant dense<0.000000e+00> : vector<64x16xf32>
    %25 = tpu.matmul %0, %24, %cst_19 {dimension_numbers = #tpu.dot_dimension_numbers<[1], [0], [0], [1], [0, 0, 1, 1], [], []>} : vector<64x32xf32>, vector<32x16xf32>, vector<64x16xf32> -> vector<64x16xf32>
    %26 = vector.broadcast %2 : vector<64x1xf32> to vector<64x16xf32>
    %27 = arith.addf %25, %26 : vector<64x16xf32>
    %c5 = arith.constant 5 : index
    %c0_20 = arith.constant 0 : index
    %c0_21 = arith.constant 0 : index
    %28 = vector.load %arg1[%c5, %c0_20, %c0_21] : memref<8x32x16xf32, #tpu.memory_space<vmem>>, vector<1x32x16xf32>
    %29 = vector.shape_cast %28 : vector<1x32x16xf32> to vector<32x16xf32>
    %cst_22 = arith.constant dense<0.000000e+00> : vector<64x16xf32>
    %30 = tpu.matmul %0, %29, %cst_22 {dimension_numbers = #tpu.dot_dimension_numbers<[1], [0], [0], [1], [0, 0, 1, 1], [], []>} : vector<64x32xf32>, vector<32x16xf32>, vector<64x16xf32> -> vector<64x16xf32>
    %31 = vector.broadcast %2 : vector<64x1xf32> to vector<64x16xf32>
    %32 = arith.addf %30, %31 : vector<64x16xf32>
    %c6 = arith.constant 6 : index
    %c0_23 = arith.constant 0 : index
    %c0_24 = arith.constant 0 : index
    %33 = vector.load %arg1[%c6, %c0_23, %c0_24] : memref<8x32x16xf32, #tpu.memory_space<vmem>>, vector<1x32x16xf32>
    %34 = vector.shape_cast %33 : vector<1x32x16xf32> to vector<32x16xf32>
    %cst_25 = arith.constant dense<0.000000e+00> : vector<64x16xf32>
    %35 = tpu.matmul %0, %34, %cst_25 {dimension_numbers = #tpu.dot_dimension_numbers<[1], [0], [0], [1], [0, 0, 1, 1], [], []>} : vector<64x32xf32>, vector<32x16xf32>, vector<64x16xf32> -> vector<64x16xf32>
    %36 = vector.broadcast %2 : vector<64x1xf32> to vector<64x16xf32>
    %37 = arith.addf %35, %36 : vector<64x16xf32>
    %c7 = arith.constant 7 : index
    %c0_26 = arith.constant 0 : index
    %c0_27 = arith.constant 0 : index
    %38 = vector.load %arg1[%c7, %c0_26, %c0_27] : memref<8x32x16xf32, #tpu.memory_space<vmem>>, vector<1x32x16xf32>
    %39 = vector.shape_cast %38 : vector<1x32x16xf32> to vector<32x16xf32>
    %cst_28 = arith.constant dense<0.000000e+00> : vector<64x16xf32>
    %40 = tpu.matmul %0, %39, %cst_28 {dimension_numbers = #tpu.dot_dimension_numbers<[1], [0], [0], [1], [0, 0, 1, 1], [], []>} : vector<64x32xf32>, vector<32x16xf32>, vector<64x16xf32> -> vector<64x16xf32>
    %41 = vector.broadcast %2 : vector<64x1xf32> to vector<64x16xf32>
    %42 = arith.addf %40, %41 : vector<64x16xf32>
    %cst_29 = arith.constant 0.000000e+00 : f32
    %43 = vector.broadcast %cst_29 : f32 to vector<16x16xf32>
    %cst_30 = arith.constant 0.000000e+00 : f32
    %44 = vector.broadcast %cst_30 : f32 to vector<16x16xf32>
    %cst_31 = arith.constant dense<0.000000e+00> : vector<64x16xf32>
    %45 = tpu.matmul %1, %43, %cst_31 {dimension_numbers = #tpu.dot_dimension_numbers<[1], [0], [0], [1], [0, 0, 1, 1], [], []>} : vector<64x16xf32>, vector<16x16xf32>, vector<64x16xf32> -> vector<64x16xf32>
    %46 = arith.addf %7, %45 : vector<64x16xf32>
    %47 = vector.extract_strided_slice %46 {offsets = [0, 0], sizes = [16, 16], strides = [1, 1]} : vector<64x16xf32> to vector<16x16xf32>
    %cst_32 = arith.constant 5.000000e-01 : f32
    %48 = vector.broadcast %cst_32 : f32 to vector<16x16xf32>
    %49 = arith.mulf %48, %47 : vector<16x16xf32>
    %50 = math.tanh %49 : vector<16x16xf32>
    %cst_33 = arith.constant 1.000000e+00 : f32
    %51 = vector.broadcast %cst_33 : f32 to vector<16x16xf32>
    %52 = arith.addf %50, %51 : vector<16x16xf32>
    %cst_34 = arith.constant 5.000000e-01 : f32
    %53 = vector.broadcast %cst_34 : f32 to vector<16x16xf32>
    %54 = arith.mulf %53, %52 : vector<16x16xf32>
    %55 = vector.extract_strided_slice %46 {offsets = [16, 0], sizes = [16, 16], strides = [1, 1]} : vector<64x16xf32> to vector<16x16xf32>
    %cst_35 = arith.constant 5.000000e-01 : f32
    %56 = vector.broadcast %cst_35 : f32 to vector<16x16xf32>
    %57 = arith.mulf %56, %55 : vector<16x16xf32>
    %58 = math.tanh %57 : vector<16x16xf32>
    %cst_36 = arith.constant 1.000000e+00 : f32
    %59 = vector.broadcast %cst_36 : f32 to vector<16x16xf32>
    %60 = arith.addf %58, %59 : vector<16x16xf32>
    %cst_37 = arith.constant 5.000000e-01 : f32
    %61 = vector.broadcast %cst_37 : f32 to vector<16x16xf32>
    %62 = arith.mulf %61, %60 : vector<16x16xf32>
    %63 = vector.extract_strided_slice %46 {offsets = [32, 0], sizes = [16, 16], strides = [1, 1]} : vector<64x16xf32> to vector<16x16xf32>
    %64 = math.tanh %63 : vector<16x16xf32>
    %65 = vector.extract_strided_slice %46 {offsets = [48, 0], sizes = [16, 16], strides = [1, 1]} : vector<64x16xf32> to vector<16x16xf32>
    %cst_38 = arith.constant 5.000000e-01 : f32
    %66 = vector.broadcast %cst_38 : f32 to vector<16x16xf32>
    %67 = arith.mulf %66, %65 : vector<16x16xf32>
    %68 = math.tanh %67 : vector<16x16xf32>
    %cst_39 = arith.constant 1.000000e+00 : f32
    %69 = vector.broadcast %cst_39 : f32 to vector<16x16xf32>
    %70 = arith.addf %68, %69 : vector<16x16xf32>
    %cst_40 = arith.constant 5.000000e-01 : f32
    %71 = vector.broadcast %cst_40 : f32 to vector<16x16xf32>
    %72 = arith.mulf %71, %70 : vector<16x16xf32>
    %73 = arith.mulf %62, %44 : vector<16x16xf32>
    %74 = arith.mulf %54, %64 : vector<16x16xf32>
    %75 = arith.addf %73, %74 : vector<16x16xf32>
    %76 = math.tanh %75 : vector<16x16xf32>
    %77 = arith.mulf %72, %76 : vector<16x16xf32>
    %cst_41 = arith.constant dense<0.000000e+00> : vector<64x16xf32>
    %78 = tpu.matmul %1, %77, %cst_41 {dimension_numbers = #tpu.dot_dimension_numbers<[1], [0], [0], [1], [0, 0, 1, 1], [], []>} : vector<64x16xf32>, vector<16x16xf32>, vector<64x16xf32> -> vector<64x16xf32>
    %79 = arith.addf %12, %78 : vector<64x16xf32>
    %80 = vector.extract_strided_slice %79 {offsets = [0, 0], sizes = [16, 16], strides = [1, 1]} : vector<64x16xf32> to vector<16x16xf32>
    %cst_42 = arith.constant 5.000000e-01 : f32
    %81 = vector.broadcast %cst_42 : f32 to vector<16x16xf32>
    %82 = arith.mulf %81, %80 : vector<16x16xf32>
    %83 = math.tanh %82 : vector<16x16xf32>
    %cst_43 = arith.constant 1.000000e+00 : f32
    %84 = vector.broadcast %cst_43 : f32 to vector<16x16xf32>
    %85 = arith.addf %83, %84 : vector<16x16xf32>
    %cst_44 = arith.constant 5.000000e-01 : f32
    %86 = vector.broadcast %cst_44 : f32 to vector<16x16xf32>
    %87 = arith.mulf %86, %85 : vector<16x16xf32>
    %88 = vector.extract_strided_slice %79 {offsets = [16, 0], sizes = [16, 16], strides = [1, 1]} : vector<64x16xf32> to vector<16x16xf32>
    %cst_45 = arith.constant 5.000000e-01 : f32
    %89 = vector.broadcast %cst_45 : f32 to vector<16x16xf32>
    %90 = arith.mulf %89, %88 : vector<16x16xf32>
    %91 = math.tanh %90 : vector<16x16xf32>
    %cst_46 = arith.constant 1.000000e+00 : f32
    %92 = vector.broadcast %cst_46 : f32 to vector<16x16xf32>
    %93 = arith.addf %91, %92 : vector<16x16xf32>
    %cst_47 = arith.constant 5.000000e-01 : f32
    %94 = vector.broadcast %cst_47 : f32 to vector<16x16xf32>
    %95 = arith.mulf %94, %93 : vector<16x16xf32>
    %96 = vector.extract_strided_slice %79 {offsets = [32, 0], sizes = [16, 16], strides = [1, 1]} : vector<64x16xf32> to vector<16x16xf32>
    %97 = math.tanh %96 : vector<16x16xf32>
    %98 = vector.extract_strided_slice %79 {offsets = [48, 0], sizes = [16, 16], strides = [1, 1]} : vector<64x16xf32> to vector<16x16xf32>
    %cst_48 = arith.constant 5.000000e-01 : f32
    %99 = vector.broadcast %cst_48 : f32 to vector<16x16xf32>
    %100 = arith.mulf %99, %98 : vector<16x16xf32>
    %101 = math.tanh %100 : vector<16x16xf32>
    %cst_49 = arith.constant 1.000000e+00 : f32
    %102 = vector.broadcast %cst_49 : f32 to vector<16x16xf32>
    %103 = arith.addf %101, %102 : vector<16x16xf32>
    %cst_50 = arith.constant 5.000000e-01 : f32
    %104 = vector.broadcast %cst_50 : f32 to vector<16x16xf32>
    %105 = arith.mulf %104, %103 : vector<16x16xf32>
    %106 = arith.mulf %95, %75 : vector<16x16xf32>
    %107 = arith.mulf %87, %97 : vector<16x16xf32>
    %108 = arith.addf %106, %107 : vector<16x16xf32>
    %109 = math.tanh %108 : vector<16x16xf32>
    %110 = arith.mulf %105, %109 : vector<16x16xf32>
    %cst_51 = arith.constant dense<0.000000e+00> : vector<64x16xf32>
    %111 = tpu.matmul %1, %110, %cst_51 {dimension_numbers = #tpu.dot_dimension_numbers<[1], [0], [0], [1], [0, 0, 1, 1], [], []>} : vector<64x16xf32>, vector<16x16xf32>, vector<64x16xf32> -> vector<64x16xf32>
    %112 = arith.addf %17, %111 : vector<64x16xf32>
    %113 = vector.extract_strided_slice %112 {offsets = [0, 0], sizes = [16, 16], strides = [1, 1]} : vector<64x16xf32> to vector<16x16xf32>
    %cst_52 = arith.constant 5.000000e-01 : f32
    %114 = vector.broadcast %cst_52 : f32 to vector<16x16xf32>
    %115 = arith.mulf %114, %113 : vector<16x16xf32>
    %116 = math.tanh %115 : vector<16x16xf32>
    %cst_53 = arith.constant 1.000000e+00 : f32
    %117 = vector.broadcast %cst_53 : f32 to vector<16x16xf32>
    %118 = arith.addf %116, %117 : vector<16x16xf32>
    %cst_54 = arith.constant 5.000000e-01 : f32
    %119 = vector.broadcast %cst_54 : f32 to vector<16x16xf32>
    %120 = arith.mulf %119, %118 : vector<16x16xf32>
    %121 = vector.extract_strided_slice %112 {offsets = [16, 0], sizes = [16, 16], strides = [1, 1]} : vector<64x16xf32> to vector<16x16xf32>
    %cst_55 = arith.constant 5.000000e-01 : f32
    %122 = vector.broadcast %cst_55 : f32 to vector<16x16xf32>
    %123 = arith.mulf %122, %121 : vector<16x16xf32>
    %124 = math.tanh %123 : vector<16x16xf32>
    %cst_56 = arith.constant 1.000000e+00 : f32
    %125 = vector.broadcast %cst_56 : f32 to vector<16x16xf32>
    %126 = arith.addf %124, %125 : vector<16x16xf32>
    %cst_57 = arith.constant 5.000000e-01 : f32
    %127 = vector.broadcast %cst_57 : f32 to vector<16x16xf32>
    %128 = arith.mulf %127, %126 : vector<16x16xf32>
    %129 = vector.extract_strided_slice %112 {offsets = [32, 0], sizes = [16, 16], strides = [1, 1]} : vector<64x16xf32> to vector<16x16xf32>
    %130 = math.tanh %129 : vector<16x16xf32>
    %131 = vector.extract_strided_slice %112 {offsets = [48, 0], sizes = [16, 16], strides = [1, 1]} : vector<64x16xf32> to vector<16x16xf32>
    %cst_58 = arith.constant 5.000000e-01 : f32
    %132 = vector.broadcast %cst_58 : f32 to vector<16x16xf32>
    %133 = arith.mulf %132, %131 : vector<16x16xf32>
    %134 = math.tanh %133 : vector<16x16xf32>
    %cst_59 = arith.constant 1.000000e+00 : f32
    %135 = vector.broadcast %cst_59 : f32 to vector<16x16xf32>
    %136 = arith.addf %134, %135 : vector<16x16xf32>
    %cst_60 = arith.constant 5.000000e-01 : f32
    %137 = vector.broadcast %cst_60 : f32 to vector<16x16xf32>
    %138 = arith.mulf %137, %136 : vector<16x16xf32>
    %139 = arith.mulf %128, %108 : vector<16x16xf32>
    %140 = arith.mulf %120, %130 : vector<16x16xf32>
    %141 = arith.addf %139, %140 : vector<16x16xf32>
    %142 = math.tanh %141 : vector<16x16xf32>
    %143 = arith.mulf %138, %142 : vector<16x16xf32>
    %cst_61 = arith.constant dense<0.000000e+00> : vector<64x16xf32>
    %144 = tpu.matmul %1, %143, %cst_61 {dimension_numbers = #tpu.dot_dimension_numbers<[1], [0], [0], [1], [0, 0, 1, 1], [], []>} : vector<64x16xf32>, vector<16x16xf32>, vector<64x16xf32> -> vector<64x16xf32>
    %145 = arith.addf %22, %144 : vector<64x16xf32>
    %146 = vector.extract_strided_slice %145 {offsets = [0, 0], sizes = [16, 16], strides = [1, 1]} : vector<64x16xf32> to vector<16x16xf32>
    %cst_62 = arith.constant 5.000000e-01 : f32
    %147 = vector.broadcast %cst_62 : f32 to vector<16x16xf32>
    %148 = arith.mulf %147, %146 : vector<16x16xf32>
    %149 = math.tanh %148 : vector<16x16xf32>
    %cst_63 = arith.constant 1.000000e+00 : f32
    %150 = vector.broadcast %cst_63 : f32 to vector<16x16xf32>
    %151 = arith.addf %149, %150 : vector<16x16xf32>
    %cst_64 = arith.constant 5.000000e-01 : f32
    %152 = vector.broadcast %cst_64 : f32 to vector<16x16xf32>
    %153 = arith.mulf %152, %151 : vector<16x16xf32>
    %154 = vector.extract_strided_slice %145 {offsets = [16, 0], sizes = [16, 16], strides = [1, 1]} : vector<64x16xf32> to vector<16x16xf32>
    %cst_65 = arith.constant 5.000000e-01 : f32
    %155 = vector.broadcast %cst_65 : f32 to vector<16x16xf32>
    %156 = arith.mulf %155, %154 : vector<16x16xf32>
    %157 = math.tanh %156 : vector<16x16xf32>
    %cst_66 = arith.constant 1.000000e+00 : f32
    %158 = vector.broadcast %cst_66 : f32 to vector<16x16xf32>
    %159 = arith.addf %157, %158 : vector<16x16xf32>
    %cst_67 = arith.constant 5.000000e-01 : f32
    %160 = vector.broadcast %cst_67 : f32 to vector<16x16xf32>
    %161 = arith.mulf %160, %159 : vector<16x16xf32>
    %162 = vector.extract_strided_slice %145 {offsets = [32, 0], sizes = [16, 16], strides = [1, 1]} : vector<64x16xf32> to vector<16x16xf32>
    %163 = math.tanh %162 : vector<16x16xf32>
    %164 = vector.extract_strided_slice %145 {offsets = [48, 0], sizes = [16, 16], strides = [1, 1]} : vector<64x16xf32> to vector<16x16xf32>
    %cst_68 = arith.constant 5.000000e-01 : f32
    %165 = vector.broadcast %cst_68 : f32 to vector<16x16xf32>
    %166 = arith.mulf %165, %164 : vector<16x16xf32>
    %167 = math.tanh %166 : vector<16x16xf32>
    %cst_69 = arith.constant 1.000000e+00 : f32
    %168 = vector.broadcast %cst_69 : f32 to vector<16x16xf32>
    %169 = arith.addf %167, %168 : vector<16x16xf32>
    %cst_70 = arith.constant 5.000000e-01 : f32
    %170 = vector.broadcast %cst_70 : f32 to vector<16x16xf32>
    %171 = arith.mulf %170, %169 : vector<16x16xf32>
    %172 = arith.mulf %161, %141 : vector<16x16xf32>
    %173 = arith.mulf %153, %163 : vector<16x16xf32>
    %174 = arith.addf %172, %173 : vector<16x16xf32>
    %175 = math.tanh %174 : vector<16x16xf32>
    %176 = arith.mulf %171, %175 : vector<16x16xf32>
    %cst_71 = arith.constant dense<0.000000e+00> : vector<64x16xf32>
    %177 = tpu.matmul %1, %176, %cst_71 {dimension_numbers = #tpu.dot_dimension_numbers<[1], [0], [0], [1], [0, 0, 1, 1], [], []>} : vector<64x16xf32>, vector<16x16xf32>, vector<64x16xf32> -> vector<64x16xf32>
    %178 = arith.addf %27, %177 : vector<64x16xf32>
    %179 = vector.extract_strided_slice %178 {offsets = [0, 0], sizes = [16, 16], strides = [1, 1]} : vector<64x16xf32> to vector<16x16xf32>
    %cst_72 = arith.constant 5.000000e-01 : f32
    %180 = vector.broadcast %cst_72 : f32 to vector<16x16xf32>
    %181 = arith.mulf %180, %179 : vector<16x16xf32>
    %182 = math.tanh %181 : vector<16x16xf32>
    %cst_73 = arith.constant 1.000000e+00 : f32
    %183 = vector.broadcast %cst_73 : f32 to vector<16x16xf32>
    %184 = arith.addf %182, %183 : vector<16x16xf32>
    %cst_74 = arith.constant 5.000000e-01 : f32
    %185 = vector.broadcast %cst_74 : f32 to vector<16x16xf32>
    %186 = arith.mulf %185, %184 : vector<16x16xf32>
    %187 = vector.extract_strided_slice %178 {offsets = [16, 0], sizes = [16, 16], strides = [1, 1]} : vector<64x16xf32> to vector<16x16xf32>
    %cst_75 = arith.constant 5.000000e-01 : f32
    %188 = vector.broadcast %cst_75 : f32 to vector<16x16xf32>
    %189 = arith.mulf %188, %187 : vector<16x16xf32>
    %190 = math.tanh %189 : vector<16x16xf32>
    %cst_76 = arith.constant 1.000000e+00 : f32
    %191 = vector.broadcast %cst_76 : f32 to vector<16x16xf32>
    %192 = arith.addf %190, %191 : vector<16x16xf32>
    %cst_77 = arith.constant 5.000000e-01 : f32
    %193 = vector.broadcast %cst_77 : f32 to vector<16x16xf32>
    %194 = arith.mulf %193, %192 : vector<16x16xf32>
    %195 = vector.extract_strided_slice %178 {offsets = [32, 0], sizes = [16, 16], strides = [1, 1]} : vector<64x16xf32> to vector<16x16xf32>
    %196 = math.tanh %195 : vector<16x16xf32>
    %197 = vector.extract_strided_slice %178 {offsets = [48, 0], sizes = [16, 16], strides = [1, 1]} : vector<64x16xf32> to vector<16x16xf32>
    %cst_78 = arith.constant 5.000000e-01 : f32
    %198 = vector.broadcast %cst_78 : f32 to vector<16x16xf32>
    %199 = arith.mulf %198, %197 : vector<16x16xf32>
    %200 = math.tanh %199 : vector<16x16xf32>
    %cst_79 = arith.constant 1.000000e+00 : f32
    %201 = vector.broadcast %cst_79 : f32 to vector<16x16xf32>
    %202 = arith.addf %200, %201 : vector<16x16xf32>
    %cst_80 = arith.constant 5.000000e-01 : f32
    %203 = vector.broadcast %cst_80 : f32 to vector<16x16xf32>
    %204 = arith.mulf %203, %202 : vector<16x16xf32>
    %205 = arith.mulf %194, %174 : vector<16x16xf32>
    %206 = arith.mulf %186, %196 : vector<16x16xf32>
    %207 = arith.addf %205, %206 : vector<16x16xf32>
    %208 = math.tanh %207 : vector<16x16xf32>
    %209 = arith.mulf %204, %208 : vector<16x16xf32>
    %cst_81 = arith.constant dense<0.000000e+00> : vector<64x16xf32>
    %210 = tpu.matmul %1, %209, %cst_81 {dimension_numbers = #tpu.dot_dimension_numbers<[1], [0], [0], [1], [0, 0, 1, 1], [], []>} : vector<64x16xf32>, vector<16x16xf32>, vector<64x16xf32> -> vector<64x16xf32>
    %211 = arith.addf %32, %210 : vector<64x16xf32>
    %212 = vector.extract_strided_slice %211 {offsets = [0, 0], sizes = [16, 16], strides = [1, 1]} : vector<64x16xf32> to vector<16x16xf32>
    %cst_82 = arith.constant 5.000000e-01 : f32
    %213 = vector.broadcast %cst_82 : f32 to vector<16x16xf32>
    %214 = arith.mulf %213, %212 : vector<16x16xf32>
    %215 = math.tanh %214 : vector<16x16xf32>
    %cst_83 = arith.constant 1.000000e+00 : f32
    %216 = vector.broadcast %cst_83 : f32 to vector<16x16xf32>
    %217 = arith.addf %215, %216 : vector<16x16xf32>
    %cst_84 = arith.constant 5.000000e-01 : f32
    %218 = vector.broadcast %cst_84 : f32 to vector<16x16xf32>
    %219 = arith.mulf %218, %217 : vector<16x16xf32>
    %220 = vector.extract_strided_slice %211 {offsets = [16, 0], sizes = [16, 16], strides = [1, 1]} : vector<64x16xf32> to vector<16x16xf32>
    %cst_85 = arith.constant 5.000000e-01 : f32
    %221 = vector.broadcast %cst_85 : f32 to vector<16x16xf32>
    %222 = arith.mulf %221, %220 : vector<16x16xf32>
    %223 = math.tanh %222 : vector<16x16xf32>
    %cst_86 = arith.constant 1.000000e+00 : f32
    %224 = vector.broadcast %cst_86 : f32 to vector<16x16xf32>
    %225 = arith.addf %223, %224 : vector<16x16xf32>
    %cst_87 = arith.constant 5.000000e-01 : f32
    %226 = vector.broadcast %cst_87 : f32 to vector<16x16xf32>
    %227 = arith.mulf %226, %225 : vector<16x16xf32>
    %228 = vector.extract_strided_slice %211 {offsets = [32, 0], sizes = [16, 16], strides = [1, 1]} : vector<64x16xf32> to vector<16x16xf32>
    %229 = math.tanh %228 : vector<16x16xf32>
    %230 = vector.extract_strided_slice %211 {offsets = [48, 0], sizes = [16, 16], strides = [1, 1]} : vector<64x16xf32> to vector<16x16xf32>
    %cst_88 = arith.constant 5.000000e-01 : f32
    %231 = vector.broadcast %cst_88 : f32 to vector<16x16xf32>
    %232 = arith.mulf %231, %230 : vector<16x16xf32>
    %233 = math.tanh %232 : vector<16x16xf32>
    %cst_89 = arith.constant 1.000000e+00 : f32
    %234 = vector.broadcast %cst_89 : f32 to vector<16x16xf32>
    %235 = arith.addf %233, %234 : vector<16x16xf32>
    %cst_90 = arith.constant 5.000000e-01 : f32
    %236 = vector.broadcast %cst_90 : f32 to vector<16x16xf32>
    %237 = arith.mulf %236, %235 : vector<16x16xf32>
    %238 = arith.mulf %227, %207 : vector<16x16xf32>
    %239 = arith.mulf %219, %229 : vector<16x16xf32>
    %240 = arith.addf %238, %239 : vector<16x16xf32>
    %241 = math.tanh %240 : vector<16x16xf32>
    %242 = arith.mulf %237, %241 : vector<16x16xf32>
    %cst_91 = arith.constant dense<0.000000e+00> : vector<64x16xf32>
    %243 = tpu.matmul %1, %242, %cst_91 {dimension_numbers = #tpu.dot_dimension_numbers<[1], [0], [0], [1], [0, 0, 1, 1], [], []>} : vector<64x16xf32>, vector<16x16xf32>, vector<64x16xf32> -> vector<64x16xf32>
    %244 = arith.addf %37, %243 : vector<64x16xf32>
    %245 = vector.extract_strided_slice %244 {offsets = [0, 0], sizes = [16, 16], strides = [1, 1]} : vector<64x16xf32> to vector<16x16xf32>
    %cst_92 = arith.constant 5.000000e-01 : f32
    %246 = vector.broadcast %cst_92 : f32 to vector<16x16xf32>
    %247 = arith.mulf %246, %245 : vector<16x16xf32>
    %248 = math.tanh %247 : vector<16x16xf32>
    %cst_93 = arith.constant 1.000000e+00 : f32
    %249 = vector.broadcast %cst_93 : f32 to vector<16x16xf32>
    %250 = arith.addf %248, %249 : vector<16x16xf32>
    %cst_94 = arith.constant 5.000000e-01 : f32
    %251 = vector.broadcast %cst_94 : f32 to vector<16x16xf32>
    %252 = arith.mulf %251, %250 : vector<16x16xf32>
    %253 = vector.extract_strided_slice %244 {offsets = [16, 0], sizes = [16, 16], strides = [1, 1]} : vector<64x16xf32> to vector<16x16xf32>
    %cst_95 = arith.constant 5.000000e-01 : f32
    %254 = vector.broadcast %cst_95 : f32 to vector<16x16xf32>
    %255 = arith.mulf %254, %253 : vector<16x16xf32>
    %256 = math.tanh %255 : vector<16x16xf32>
    %cst_96 = arith.constant 1.000000e+00 : f32
    %257 = vector.broadcast %cst_96 : f32 to vector<16x16xf32>
    %258 = arith.addf %256, %257 : vector<16x16xf32>
    %cst_97 = arith.constant 5.000000e-01 : f32
    %259 = vector.broadcast %cst_97 : f32 to vector<16x16xf32>
    %260 = arith.mulf %259, %258 : vector<16x16xf32>
    %261 = vector.extract_strided_slice %244 {offsets = [32, 0], sizes = [16, 16], strides = [1, 1]} : vector<64x16xf32> to vector<16x16xf32>
    %262 = math.tanh %261 : vector<16x16xf32>
    %263 = vector.extract_strided_slice %244 {offsets = [48, 0], sizes = [16, 16], strides = [1, 1]} : vector<64x16xf32> to vector<16x16xf32>
    %cst_98 = arith.constant 5.000000e-01 : f32
    %264 = vector.broadcast %cst_98 : f32 to vector<16x16xf32>
    %265 = arith.mulf %264, %263 : vector<16x16xf32>
    %266 = math.tanh %265 : vector<16x16xf32>
    %cst_99 = arith.constant 1.000000e+00 : f32
    %267 = vector.broadcast %cst_99 : f32 to vector<16x16xf32>
    %268 = arith.addf %266, %267 : vector<16x16xf32>
    %cst_100 = arith.constant 5.000000e-01 : f32
    %269 = vector.broadcast %cst_100 : f32 to vector<16x16xf32>
    %270 = arith.mulf %269, %268 : vector<16x16xf32>
    %271 = arith.mulf %260, %240 : vector<16x16xf32>
    %272 = arith.mulf %252, %262 : vector<16x16xf32>
    %273 = arith.addf %271, %272 : vector<16x16xf32>
    %274 = math.tanh %273 : vector<16x16xf32>
    %275 = arith.mulf %270, %274 : vector<16x16xf32>
    %cst_101 = arith.constant dense<0.000000e+00> : vector<64x16xf32>
    %276 = tpu.matmul %1, %275, %cst_101 {dimension_numbers = #tpu.dot_dimension_numbers<[1], [0], [0], [1], [0, 0, 1, 1], [], []>} : vector<64x16xf32>, vector<16x16xf32>, vector<64x16xf32> -> vector<64x16xf32>
    %277 = arith.addf %42, %276 : vector<64x16xf32>
    %278 = vector.extract_strided_slice %277 {offsets = [0, 0], sizes = [16, 16], strides = [1, 1]} : vector<64x16xf32> to vector<16x16xf32>
    %cst_102 = arith.constant 5.000000e-01 : f32
    %279 = vector.broadcast %cst_102 : f32 to vector<16x16xf32>
    %280 = arith.mulf %279, %278 : vector<16x16xf32>
    %281 = math.tanh %280 : vector<16x16xf32>
    %cst_103 = arith.constant 1.000000e+00 : f32
    %282 = vector.broadcast %cst_103 : f32 to vector<16x16xf32>
    %283 = arith.addf %281, %282 : vector<16x16xf32>
    %cst_104 = arith.constant 5.000000e-01 : f32
    %284 = vector.broadcast %cst_104 : f32 to vector<16x16xf32>
    %285 = arith.mulf %284, %283 : vector<16x16xf32>
    %286 = vector.extract_strided_slice %277 {offsets = [16, 0], sizes = [16, 16], strides = [1, 1]} : vector<64x16xf32> to vector<16x16xf32>
    %cst_105 = arith.constant 5.000000e-01 : f32
    %287 = vector.broadcast %cst_105 : f32 to vector<16x16xf32>
    %288 = arith.mulf %287, %286 : vector<16x16xf32>
    %289 = math.tanh %288 : vector<16x16xf32>
    %cst_106 = arith.constant 1.000000e+00 : f32
    %290 = vector.broadcast %cst_106 : f32 to vector<16x16xf32>
    %291 = arith.addf %289, %290 : vector<16x16xf32>
    %cst_107 = arith.constant 5.000000e-01 : f32
    %292 = vector.broadcast %cst_107 : f32 to vector<16x16xf32>
    %293 = arith.mulf %292, %291 : vector<16x16xf32>
    %294 = vector.extract_strided_slice %277 {offsets = [32, 0], sizes = [16, 16], strides = [1, 1]} : vector<64x16xf32> to vector<16x16xf32>
    %295 = math.tanh %294 : vector<16x16xf32>
    %296 = vector.extract_strided_slice %277 {offsets = [48, 0], sizes = [16, 16], strides = [1, 1]} : vector<64x16xf32> to vector<16x16xf32>
    %cst_108 = arith.constant 5.000000e-01 : f32
    %297 = vector.broadcast %cst_108 : f32 to vector<16x16xf32>
    %298 = arith.mulf %297, %296 : vector<16x16xf32>
    %299 = math.tanh %298 : vector<16x16xf32>
    %cst_109 = arith.constant 1.000000e+00 : f32
    %300 = vector.broadcast %cst_109 : f32 to vector<16x16xf32>
    %301 = arith.addf %299, %300 : vector<16x16xf32>
    %cst_110 = arith.constant 5.000000e-01 : f32
    %302 = vector.broadcast %cst_110 : f32 to vector<16x16xf32>
    %303 = arith.mulf %302, %301 : vector<16x16xf32>
    %304 = arith.mulf %293, %273 : vector<16x16xf32>
    %305 = arith.mulf %285, %295 : vector<16x16xf32>
    %306 = arith.addf %304, %305 : vector<16x16xf32>
    %307 = math.tanh %306 : vector<16x16xf32>
    %308 = arith.mulf %303, %307 : vector<16x16xf32>
    %309 = tpu.concatenate %77, %110, %143, %176, %209, %242, %275, %308 in 0 : vector<16x16xf32>, vector<16x16xf32>, vector<16x16xf32>, vector<16x16xf32>, vector<16x16xf32>, vector<16x16xf32>, vector<16x16xf32>, vector<16x16xf32> -> vector<128x16xf32>
    %c0_111 = arith.constant 0 : index
    %c0_112 = arith.constant 0 : index
    %310 = vector.load %arg5[%c0_111, %c0_112] : memref<17x128xf32, #tpu.memory_space<vmem>>, vector<17x128xf32>
    %cst_113 = arith.constant dense<0.000000e+00> : vector<17x16xf32>
    %311 = tpu.matmul %310, %309, %cst_113 {dimension_numbers = #tpu.dot_dimension_numbers<[1], [0], [0], [1], [0, 0, 1, 1], [], []>} : vector<17x128xf32>, vector<128x16xf32>, vector<17x16xf32> -> vector<17x16xf32>
    %c0_114 = arith.constant 0 : index
    %c0_115 = arith.constant 0 : index
    %312 = vector.load %arg6[%c0_114, %c0_115] : memref<17x1xf32, #tpu.memory_space<vmem>>, vector<17x1xf32>
    %313 = vector.broadcast %312 : vector<17x1xf32> to vector<17x16xf32>
    %314 = arith.addf %311, %313 : vector<17x16xf32>
    %cst_116 = arith.constant 5.000000e-01 : f32
    %315 = vector.broadcast %cst_116 : f32 to vector<17x16xf32>
    %316 = arith.mulf %315, %314 : vector<17x16xf32>
    %317 = math.tanh %316 : vector<17x16xf32>
    %cst_117 = arith.constant 1.000000e+00 : f32
    %318 = vector.broadcast %cst_117 : f32 to vector<17x16xf32>
    %319 = arith.addf %317, %318 : vector<17x16xf32>
    %cst_118 = arith.constant 5.000000e-01 : f32
    %320 = vector.broadcast %cst_118 : f32 to vector<17x16xf32>
    %321 = arith.mulf %320, %319 : vector<17x16xf32>
    %c0_119 = arith.constant 0 : index
    %c0_120 = arith.constant 0 : index
    %322 = vector.load %arg7[%c0_119, %c0_120] : memref<17x1xf32, #tpu.memory_space<vmem>>, vector<17x1xf32>
    %323 = vector.broadcast %322 : vector<17x1xf32> to vector<17x16xf32>
    %324 = arith.mulf %321, %323 : vector<17x16xf32>
    %cst_121 = arith.constant dense<0.000000e+00> : vector<16xf32>
    %325 = vector.multi_reduction <add>, %324, %cst_121 [0] : vector<17x16xf32> to vector<16xf32>
    %326 = vector.shape_cast %325 : vector<16xf32> to vector<1x16xf32>
    %c0_122 = arith.constant 0 : index
    %327 = memref.load %arg8[%c0_122] : memref<1xf32, #tpu.memory_space<smem>>
    %328 = vector.broadcast %327 : f32 to vector<1x16xf32>
    %329 = arith.addf %326, %328 : vector<1x16xf32>
    %c0_123 = arith.constant 0 : index
    %c0_124 = arith.constant 0 : index
    %330 = vector.load %arg9[%c0_123, %c0_124] : memref<1x16xf32, #tpu.memory_space<vmem>>, vector<1x16xf32>
    tpu.vector_store %arg9[%c0_123, %c0_124], %329 {strides = array<i32>} : memref<1x16xf32, #tpu.memory_space<vmem>>, vector<1x16xf32>,
    return
  }
  func.func @transform_0(%arg0: i32) -> (i32, i32, i32) {
    %c0_i32 = arith.constant 0 : i32
    %c0_i32_0 = arith.constant 0 : i32
    %c0_i32_1 = arith.constant 0 : i32
    return %c0_i32, %c0_i32_0, %arg0 : i32, i32, i32
  }
  func.func @transform_1(%arg0: i32) -> (i32, i32) {
    %c0_i32 = arith.constant 0 : i32
    %c0_i32_0 = arith.constant 0 : i32
    %c0_i32_1 = arith.constant 0 : i32
    return %c0_i32, %c0_i32_0 : i32, i32
  }
  func.func @transform_2(%arg0: i32) -> (i32, i32) {
    %c0_i32 = arith.constant 0 : i32
    %c0_i32_0 = arith.constant 0 : i32
    %c0_i32_1 = arith.constant 0 : i32
    return %c0_i32, %c0_i32_0 : i32, i32
  }
  func.func @transform_3(%arg0: i32) -> (i32, i32) {
    %c0_i32 = arith.constant 0 : i32
    %c0_i32_0 = arith.constant 0 : i32
    %c0_i32_1 = arith.constant 0 : i32
    return %c0_i32, %c0_i32_0 : i32, i32
  }
  func.func @transform_4(%arg0: i32) -> (i32, i32) {
    %c0_i32 = arith.constant 0 : i32
    %c0_i32_0 = arith.constant 0 : i32
    %c0_i32_1 = arith.constant 0 : i32
    return %c0_i32, %c0_i32_0 : i32, i32
  }
  func.func @transform_5(%arg0: i32) -> (i32, i32) {
    %c0_i32 = arith.constant 0 : i32
    %c0_i32_0 = arith.constant 0 : i32
    %c0_i32_1 = arith.constant 0 : i32
    return %c0_i32, %c0_i32_0 : i32, i32
  }
  func.func @transform_6(%arg0: i32) -> (i32, i32) {
    %c0_i32 = arith.constant 0 : i32
    %c0_i32_0 = arith.constant 0 : i32
    %c0_i32_1 = arith.constant 0 : i32
    return %c0_i32, %c0_i32_0 : i32, i32
  }
  func.func @transform_7(%arg0: i32) -> i32 {
    %c0_i32 = arith.constant 0 : i32
    %c0_i32_0 = arith.constant 0 : i32
    return %c0_i32 : i32
  }
  func.func @transform_8(%arg0: i32) -> (i32, i32) {
    %c0_i32 = arith.constant 0 : i32
    %c0_i32_0 = arith.constant 0 : i32
    return %c0_i32, %arg0 : i32, i32
  }
}

</mosaic_0001>

<bundles_post_ra>
// kernel: tpu_custom_call.1
= control target key start
LH: loop header
LB: loop body
LE: loop exit
PB: predicated region body
PF: predicated region fallthrough
CT: control target
= control target key end

     0   :  { %vm99_vm0 = vcmask 261120   ;;  %s4212_s0 = inlined_call_operand.vmem [shape: f32[8,32,16], index: 0, kind: input, shape index: {}]   ;;  %s4213_s1 = inlined_call_operand.vmem [shape: f32[64,32], index: 1, kind: input, shape index: {}]   ;;  %s4214_s2 = inlined_call_operand.vmem [shape: f32[64,16], index: 2, kind: input, shape index: {}]   ;;  %s4215_s3 = inlined_call_operand.vmem [shape: f32[64,1], index: 3, kind: input, shape index: {}]   ;;  %s4216_s4 = inlined_call_operand.vmem [shape: f32[17,128], index: 4, kind: input, shape index: {}]   ;;  %s4217_s5 = inlined_call_operand.vmem [shape: f32[17,1], index: 5, kind: input, shape index: {}]   ;;  %s4218_s6 = inlined_call_operand.vmem [shape: f32[17,1], index: 6, kind: input, shape index: {}]   ;;  %s4219_s7 = inlined_call_operand.<no memory space> [shape: f32[1], index: 7, kind: input, shape index: {}]   ;;  %s4220_s8 = inlined_call_operand.hbm [shape: f32[1,16], index: 8, kind: output, shape index: {}]  }
   0x1   :  { %v58_v0 = vld [vmem:[%s4212_s0 + $0x18] sm:$0xff]  ;;  %v57_v2 = vld [vmem:[%s4212_s0 + $0x10] sm:$0xff]  ;;  %v56_v4 = vld [vmem:[%s4212_s0 + $0x8] sm:$0xff] }
   0x2   :  { %v2403_v1 = vld [vmem:[%s4212_s0 + $0x58] sm:$0xff]  ;;  %2730 = vmatprep.subr.mxu1 %v58_v0  ;;  %v2402_v3 = vld [vmem:[%s4212_s0 + $0x50] sm:$0xff]  ;;  %v2401_v5 = vld [vmem:[%s4212_s0 + $0x48] sm:$0xff] }
   0x3   :  { %2770 = vmatprep.subr.mxu0 %v2403_v1  ;;  %2731 = vmatpush3.msra.mxu1 %v58_v0  ;;  %v55_v6 = vld [vmem:[%s4212_s0] sm:$0xff]  ;;  %v3340_v9 = vld [vmem:[%s4213_s1 + $0x8] sm:$0xff]  ;;  %v3347_v10 = vld [vmem:[%s4213_s1 + $0x10] sm:$0xff] }
   0x4   :  { %2771 = vmatpush3.msra.mxu0 %v2403_v1  ;;  %2732 = vmatprep.subr.mxu1 %v57_v2  ;;  %v2400_v7 = vld [vmem:[%s4212_s0 + $0x40] sm:$0xff]  ;;  %v2391_v11 = vld [vmem:[%s4212_s0 + $0x38] sm:$0xff]  ;;  %v2390_v15 = vld [vmem:[%s4212_s0 + $0x30] sm:$0xff] }
   0x5   :  { %2772 = vmatprep.subr.mxu0 %v2402_v3  ;;  %2733 = vmatpush3.msra.mxu1 %v57_v2  ;;  %v3335_v8 = vld [vmem:[%s4213_s1] sm:$0xff]  ;;  %v2427_v12 = vld [vmem:[%s4212_s0 + $0x98] sm:$0xff]  ;;  %v2426_v16 = vld [vmem:[%s4212_s0 + $0x90] sm:$0xff] }
   0x6   :  { %2773 = vmatpush3.msra.mxu0 %v2402_v3  ;;  %2734 = vmatprep.subr.mxu1 %v56_v4  ;;  %v3368_v13 = vld [vmem:[%s4213_s1 + $0x18] sm:$0xff]  ;;  %v3373_v14 = vld [vmem:[%s4213_s1 + $0x20] sm:$0xff]  ;;  %v3392_v17 = vld [vmem:[%s4213_s1 + $0x28] sm:$0xff] }
   0x7   :  { %2774 = vmatprep.subr.mxu0 %v2401_v5  ;;  %2735 = vmatpush3.msra.mxu1 %v56_v4  ;;  %v3397_v18 = vld [vmem:[%s4213_s1 + $0x30] sm:$0xff]  ;;  %v2389_v19 = vld [vmem:[%s4212_s0 + $0x28] sm:$0xff]  ;;  %v3416_v21 = vld [vmem:[%s4213_s1 + $0x38] sm:$0xff] }
   0x8   :  { %2775 = vmatpush3.msra.mxu0 %v2401_v5  ;;  %2736 = vmatprep.subr.mxu1 %v55_v6  ;;  %v2425_v20 = vld [vmem:[%s4212_s0 + $0x88] sm:$0xff]  ;;  %v2388_v22 = vld [vmem:[%s4212_s0 + $0x20] sm:$0xff] }
   0x9   :  { %2776 = vmatprep.subr.mxu0 %v2400_v7  ;;  %2737 = vmatpush3.msra.mxu1 %v55_v6  ;;  %v2424_v23 = vld [vmem:[%s4212_s0 + $0x80] sm:$0xff] }
   0xa   :  { %2738 = vmatprep.mubr.msk.f32.mxu1 %vm99_vm0, %v3335_v8  ;;  %2777 = vmatpush3.msra.mxu0 %v2400_v7 }
   0xb   :  { %2778 = vmatprep.mubr.msk.f32.mxu0 %vm99_vm0, %v3335_v8  ;;  %2739 = vmatmul.mubr.msk.f32.vlgmr.msra.gmra.mxu1 %vm99_vm0, %v3340_v9 }
   0xc   :  { %2779 = vmatmul.mubr.msk.f32.vlgmr.msra.gmra.mxu0 %vm99_vm0, %v3340_v9  ;;  %2741 = vmatprep.mubr.msk.f32.mxu1 %vm99_vm0, %v3347_v10 }
   0xd   :  { %2781 = vmatprep.mubr.msk.f32.mxu0 %vm99_vm0, %v3347_v10  ;;  %2750 = vmatprep.subr.mxu1 %v2391_v11 }
   0xe   :  { %2810 = vmatprep.subr.mxu0 %v2427_v12  ;;  %2751 = vmatpush3.msra.mxu1 %v2391_v11 }
   0xf   :  { %2811 = vmatpush3.msra.mxu0 %v2427_v12  ;;  %2742 = vmatmul.mubr.msk.f32.gmra.mxu1 %vm99_vm0, %v3368_v13 }
  0x10   :  { %2782 = vmatmul.mubr.msk.f32.gmra.mxu0 %vm99_vm0, %v3368_v13  ;;  %2744 = vmatprep.mubr.msk.f32.mxu1 %vm99_vm0, %v3373_v14 }
  0x11   :  { %2784 = vmatprep.mubr.msk.f32.mxu0 %vm99_vm0, %v3373_v14  ;;  %2752 = vmatprep.subr.mxu1 %v2390_v15 }
  0x12   :  { %2812 = vmatprep.subr.mxu0 %v2426_v16  ;;  %2753 = vmatpush3.msra.mxu1 %v2390_v15 }
  0x13   :  { %2813 = vmatpush3.msra.mxu0 %v2426_v16  ;;  %2745 = vmatmul.mubr.msk.f32.gmra.mxu1 %vm99_vm0, %v3392_v17 }
  0x14   :  { %2785 = vmatmul.mubr.msk.f32.gmra.mxu0 %vm99_vm0, %v3392_v17  ;;  %2747 = vmatprep.mubr.msk.f32.mxu1 %vm99_vm0, %v3397_v18 }
  0x15   :  { %2787 = vmatprep.mubr.msk.f32.mxu0 %vm99_vm0, %v3397_v18  ;;  %2754 = vmatprep.subr.mxu1 %v2389_v19 }
  0x16   :  { %2814 = vmatprep.subr.mxu0 %v2425_v20 }
  0x17   :  { %14 = vsyncpa [#allocation4], 0  ;;  %2755 = vmatpush3.msra.mxu1 %v2389_v19  ;;  %2815 = vmatpush3.msra.mxu0 %v2425_v20  ;;  %v2415_v24 = vld [vmem:[%s4212_s0 + $0x78] sm:$0xff]  ;;  %v2414_v26 = vld [vmem:[%s4212_s0 + $0x70] sm:$0xff]  ;;  %v4221_v33 = vmov 0.0   ;;  %v3260_v36 = vmov 0  }
  0x18   :  { %2748 = vmatmul.mubr.msk.f32.gmra.mxu1 %vm99_vm0, %v3416_v21  ;;  %2788 = vmatmul.mubr.msk.f32.gmra.mxu0 %vm99_vm0, %v3416_v21  ;;  %v2451_v25 = vld [vmem:[%s4212_s0 + $0xd8] sm:$0xff]  ;;  %v2450_v27 = vld [vmem:[%s4212_s0 + $0xd0] sm:$0xff]  ;;  %v2413_v28 = vld [vmem:[%s4212_s0 + $0x68] sm:$0xff]  ;;  %vm999_vm1 = vcmask 130048   ;;  %vm3261_vm2 = vmmov 0   ;;  %vm2353_vm3 = vcmask 122880  }
  0x19   :  { %2756 = vmatprep.subr.mxu1 %v2388_v22  ;;  %2816 = vmatprep.subr.mxu0 %v2424_v23  ;;  %v2449_v29 = vld [vmem:[%s4212_s0 + $0xc8] sm:$0xff]  ;;  %v2412_v30 = vld [vmem:[%s4212_s0 + $0x60] sm:$0xff]  ;;  %v2439_v32 = vld [vmem:[%s4212_s0 + $0xb8] sm:$0xff]  ;;  %s3262_s1 = smov [#allocation3]  }
  0x1a   :  { %2757 = vmatpush3.msra.mxu1 %v2388_v22  ;;  %2758 = vmatprep.mubr.msk.f32.mxu1 %vm99_vm0, %v3335_v8  ;;  %v2448_v31 = vld [vmem:[%s4212_s0 + $0xc0] sm:$0xff]  ;;  %v2438_v34 = vld [vmem:[%s4212_s0 + $0xb0] sm:$0xff]  ;;  %v48_v35 = vld [vmem:[%s4215_s3 + $0x8] sm:$0xff]  ;;  %s2372_s9 = sshll.u32 %s3262_s1, 4  ;;  %s2373_s9 = int_to_ptr.vmem [resolvable:$true] %s2372_s9 }
  0x1b   :  { %2817 = vmatpush3.msra.mxu0 %v2424_v23  ;;  %2818 = vmatprep.mubr.msk.f32.mxu0 %vm99_vm0, %v3335_v8  ;;  %v2437_v37 = vld [vmem:[%s4212_s0 + $0xa8] sm:$0xff]  ;;  %v47_v38 = vld [vmem:[%s4215_s3] sm:$0xff]  ;;  %v2463_v41 = vld [vmem:[%s4212_s0 + $0xf8] sm:$0xff]  ;;  %s3237_s10 = scalar_lea.vmem %s2373_s9, 16  ;;  %p3242_p1 = scmp.lt.s32.totalorder %s2373_s9, %s2373_s9 }
  0x1c   :  { %2759 = vmatmul.mubr.msk.f32.vlgmr.msra.gmra.mxu1 %vm99_vm0, %v3340_v9  ;;  %2819 = vmatmul.mubr.msk.f32.vlgmr.msra.gmra.mxu0 %vm99_vm0, %v3340_v9  ;;  %v2436_v39 = vld [vmem:[%s4212_s0 + $0xa0] sm:$0xff]  ;;  %v50_v42 = vld [vmem:[%s4215_s3 + $0x18] sm:$0xff]  ;;  %v3552_v43 = vld [vmem:[%s4214_s2 + $0x8] sm:$0xff]  ;;  %p3238_p0 = scmp.ne.s32.totalorder %s2373_s9, %s3237_s10 }
  0x1d   :  { %2761 = vmatprep.mubr.msk.f32.mxu1 %vm99_vm0, %v3347_v10  ;;  %2821 = vmatprep.mubr.msk.f32.mxu0 %vm99_vm0, %v3347_v10  ;;  %v3535_v40 = vld [vmem:[%s4214_s2] sm:$0xff]  ;;  %v3559_v44 = vld [vmem:[%s4214_s2 + $0x10] sm:$0xff]  ;;  %v52_v47 = vld [vmem:[%s4215_s3 + $0x28] sm:$0xff] }
  0x1e   :  { %2790 = vmatprep.subr.mxu1 %v2415_v24  ;;  %2850 = vmatprep.subr.mxu0 %v2451_v25  ;;  %v49_v45 = vld [vmem:[%s4215_s3 + $0x10] sm:$0xff]  ;;  %v3581_v48 = vld [vmem:[%s4214_s2 + $0x18] sm:$0xff]  ;;  %v3586_v49 = vld [vmem:[%s4214_s2 + $0x20] sm:$0xff] }
  0x1f   :  { %2791 = vmatpush3.msra.mxu1 %v2415_v24  ;;  %2851 = vmatpush3.msra.mxu0 %v2451_v25  ;;  %v2462_v46 = vld [vmem:[%s4212_s0 + $0xf0] sm:$0xff]  ;;  %v51_v50 = vld [vmem:[%s4215_s3 + $0x20] sm:$0xff]  ;;  %v2461_v51 = vld [vmem:[%s4212_s0 + $0xe8] sm:$0xff] }
  0x20   :  { %2762 = vmatmul.mubr.msk.f32.gmra.mxu1 %vm99_vm0, %v3368_v13  ;;  %2822 = vmatmul.mubr.msk.f32.gmra.mxu0 %vm99_vm0, %v3368_v13  ;;  %v54_v52 = vld [vmem:[%s4215_s3 + $0x38] sm:$0xff]  ;;  %v3608_v53 = vld [vmem:[%s4214_s2 + $0x28] sm:$0xff]  ;;  %v3613_v54 = vld [vmem:[%s4214_s2 + $0x30] sm:$0xff] }
  0x21   :  { %2764 = vmatprep.mubr.msk.f32.mxu1 %vm99_vm0, %v3373_v14  ;;  %2824 = vmatprep.mubr.msk.f32.mxu0 %vm99_vm0, %v3373_v14  ;;  %v53_v55 = vld [vmem:[%s4215_s3 + $0x30] sm:$0xff]  ;;  %v2460_v56 = vld [vmem:[%s4212_s0 + $0xe0] sm:$0xff]  ;;  %v3635_v58 = vld [vmem:[%s4214_s2 + $0x38] sm:$0xff] }
  0x22   :  { %2792 = vmatprep.subr.mxu1 %v2414_v26  ;;  %2852 = vmatprep.subr.mxu0 %v2450_v27  ;;  %v2219_v57 = vld [vmem:[%s4217_s5] sm:$0xff]  ;;  %v2220_v59 = vld [vmem:[%s4217_s5 + $0x8] sm:$0xff]  ;;  %v2221_v60 = vld [vmem:[%s4217_s5 + $0x10] sm:$0x1]  ;;  %s3241_s5 = scalar_lea.vmem %s2373_s9, 32 }
  0x23   :  { %2793 = vmatpush3.msra.mxu1 %v2414_v26  ;;  %2853 = vmatpush3.msra.mxu0 %v2450_v27  ;;  %v2329_v61 = vld [vmem:[%s4218_s6] sm:$0xff]  ;;  %v2330_v62 = vld [vmem:[%s4218_s6 + $0x8] sm:$0xff]  ;;  %v2331_v63 = vld [vmem:[%s4218_s6 + $0x10] sm:$0x1]  ;;  %p3243_p2 = scmp.lt.s32.totalorder %s3241_s5, %s3237_s10 }
  0x24   :  { %2765 = vmatmul.mubr.msk.f32.gmra.mxu1 %vm99_vm0, %v3392_v17  ;;  %2825 = vmatmul.mubr.msk.f32.gmra.mxu0 %vm99_vm0, %v3392_v17 }
  0x25   :  { %2767 = vmatprep.mubr.msk.f32.mxu1 %vm99_vm0, %v3397_v18  ;;  %2827 = vmatprep.mubr.msk.f32.mxu0 %vm99_vm0, %v3397_v18  ;;  %p3244_p3 = por %p3243_p2, %p3242_p1 }
  0x26   :  { %2794 = vmatprep.subr.mxu1 %v2413_v28  ;;  %2854 = vmatprep.subr.mxu0 %v2449_v29 }
  0x27   :  { %2795 = vmatpush3.msra.mxu1 %v2413_v28  ;;  %2855 = vmatpush3.msra.mxu0 %v2449_v29  ;;  %p3245_p4 = pnand %p3244_p3, %p3238_p0 }
  0x28   :  { %2768 = vmatmul.mubr.msk.f32.gmra.mxu1 %vm99_vm0, %v3416_v21  ;;  %2828 = vmatmul.mubr.msk.f32.gmra.mxu0 %vm99_vm0, %v3416_v21 }
  0x29   :  { %2796 = vmatprep.subr.mxu1 %v2412_v30  ;;  %2856 = vmatprep.subr.mxu0 %v2448_v31 }
  0x2a   :  { %2797 = vmatpush3.msra.mxu1 %v2412_v30  ;;  %2798 = vmatprep.mubr.msk.f32.mxu1 %vm99_vm0, %v3335_v8 }
  0x2b   :  { %2857 = vmatpush3.msra.mxu0 %v2448_v31  ;;  %2858 = vmatprep.mubr.msk.f32.mxu0 %vm99_vm0, %v3335_v8 }
  0x2c   :  { %2799 = vmatmul.mubr.msk.f32.vlgmr.msra.gmra.mxu1 %vm99_vm0, %v3340_v9  ;;  %2859 = vmatmul.mubr.msk.f32.vlgmr.msra.gmra.mxu0 %vm99_vm0, %v3340_v9 }
  0x2d   :  { %2801 = vmatprep.mubr.msk.f32.mxu1 %vm99_vm0, %v3347_v10  ;;  %2861 = vmatprep.mubr.msk.f32.mxu0 %vm99_vm0, %v3347_v10 }
  0x2e   :  { %2830 = vmatprep.subr.mxu1 %v2439_v32  ;;  %2890 = vmatprep.subr.mxu0 %v4221_v33 }
  0x2f   :  { %2831 = vmatpush3.msra.mxu1 %v2439_v32  ;;  %2891 = vmatpush3.msra.mxu0 %v4221_v33 }
  0x30   :  { %2802 = vmatmul.mubr.msk.f32.gmra.mxu1 %vm99_vm0, %v3368_v13  ;;  %2862 = vmatmul.mubr.msk.f32.gmra.mxu0 %vm99_vm0, %v3368_v13 }
  0x31   :  { %2804 = vmatprep.mubr.msk.f32.mxu1 %vm99_vm0, %v3373_v14  ;;  %2864 = vmatprep.mubr.msk.f32.mxu0 %vm99_vm0, %v3373_v14 }
  0x32   :  { %2832 = vmatprep.subr.mxu1 %v2438_v34  ;;  %3061 = vset.pattern.permute.xlu0 %v3260_v36 }
  0x33   :  { %2833 = vmatpush3.msra.mxu1 %v2438_v34  ;;  %66 = vperm.xlu0 %3061, %v48_v35  }
  0x34   :  { %2805 = vmatmul.mubr.msk.f32.gmra.mxu1 %vm99_vm0, %v3392_v17  ;;  %2865 = vmatmul.mubr.msk.f32.gmra.mxu0 %vm99_vm0, %v3392_v17 }
  0x35   :  { %2807 = vmatprep.mubr.msk.f32.mxu1 %vm99_vm0, %v3397_v18  ;;  %2867 = vmatprep.mubr.msk.f32.mxu0 %vm99_vm0, %v3397_v18 }
  0x36   :  { %2834 = vmatprep.subr.mxu1 %v2437_v37  ;;  %3062 = vset.pattern.permute.xlu1 %v3260_v36 }
  0x37   :  { %2835 = vmatpush3.msra.mxu1 %v2437_v37  ;;  %61 = vperm.xlu1 %3062, %v47_v38  }
  0x38   :  { %2808 = vmatmul.mubr.msk.f32.gmra.mxu1 %vm99_vm0, %v3416_v21  ;;  %2868 = vmatmul.mubr.msk.f32.gmra.mxu0 %vm99_vm0, %v3416_v21 }
  0x39   :  { %2836 = vmatprep.subr.mxu1 %v2436_v39  ;;  %2838 = vmatprep.mubr.msk.f32.mxu1 %vm99_vm0, %v3335_v8 }
  0x3a   :  { %2837 = vmatpush3.msra.mxu1 %v2436_v39  ;;  %2892 = vmatprep.mubr.msk.f32.mxu0 %vm999_vm1, %v3535_v40 }
  0x3b   :  { %2870 = vmatprep.subr.mxu1 %v2463_v41  ;;  %76 = vperm.xlu0 %3061, %v50_v42  }
  0x3c   :  { %2839 = vmatmul.mubr.msk.f32.vlgmr.msra.gmra.mxu1 %vm99_vm0, %v3340_v9  ;;  %2893 = vmatmul.mubr.msk.f32.vlgmr.msra.gmra.mxu0 %vm999_vm1, %v3552_v43 }
  0x3d   :  { %2841 = vmatprep.mubr.msk.f32.mxu1 %vm99_vm0, %v3347_v10  ;;  %2895 = vmatprep.mubr.msk.f32.mxu0 %vm999_vm1, %v3559_v44 }
  0x3e   :  { %2871 = vmatpush3.msra.mxu1 %v2463_v41  ;;  %71 = vperm.xlu1 %3062, %v49_v45  }
  0x3f   :  { %2872 = vmatprep.subr.mxu1 %v2462_v46  ;;  %86 = vperm.xlu0 %3061, %v52_v47  }
  0x40   :  { %2842 = vmatmul.mubr.msk.f32.gmra.mxu1 %vm99_vm0, %v3368_v13  ;;  %2896 = vmatmul.mubr.msk.f32.gmra.mxu0 %vm999_vm1, %v3581_v48 }
  0x41   :  { %2844 = vmatprep.mubr.msk.f32.mxu1 %vm99_vm0, %v3373_v14  ;;  %2898 = vmatprep.mubr.msk.f32.mxu0 %vm999_vm1, %v3586_v49 }
  0x42   :  { %2873 = vmatpush3.msra.mxu1 %v2462_v46  ;;  %81 = vperm.xlu1 %3062, %v51_v50  }
  0x43   :  { %2874 = vmatprep.subr.mxu1 %v2461_v51  ;;  %96 = vperm.xlu0 %3061, %v54_v52  }
  0x44   :  { %2845 = vmatmul.mubr.msk.f32.gmra.mxu1 %vm99_vm0, %v3392_v17  ;;  %2899 = vmatmul.mubr.msk.f32.gmra.mxu0 %vm999_vm1, %v3608_v53 }
  0x45   :  { %2847 = vmatprep.mubr.msk.f32.mxu1 %vm99_vm0, %v3397_v18  ;;  %2901 = vmatprep.mubr.msk.f32.mxu0 %vm999_vm1, %v3613_v54 }
  0x46   :  { %2875 = vmatpush3.msra.mxu1 %v2461_v51  ;;  %91 = vperm.xlu1 %3062, %v53_v55  }
  0x47   :  { %2876 = vmatprep.subr.mxu1 %v2460_v56  ;;  %2224 = vperm.xlu0 %3061, %v2219_v57  }
  0x48   :  { %2848 = vmatmul.mubr.msk.f32.gmra.mxu1 %vm99_vm0, %v3416_v21  ;;  %2902 = vmatmul.mubr.msk.f32.gmra.mxu0 %vm999_vm1, %v3635_v58 }
  0x49   :  { %2877 = vmatpush3.msra.mxu1 %v2460_v56  ;;  %2878 = vmatprep.mubr.msk.f32.mxu1 %vm99_vm0, %v3335_v8 }
  0x4a   :  { %2229 = vperm.xlu1 %3062, %v2220_v59   ;;  %2924 = vmatprep.mubr.msk.f32.mxu0 %vm999_vm1, %v3535_v40 }
  0x4b   :  { %2234 = vperm.xlu0 %3061, %v2221_v60  }
  0x4c   :  { %2879 = vmatmul.mubr.msk.f32.vlgmr.msra.gmra.mxu1 %vm99_vm0, %v3340_v9 }
  0x4d   :  { %2881 = vmatprep.mubr.msk.f32.mxu1 %vm99_vm0, %v3347_v10 }
  0x4e   :  { %2334 = vperm.xlu1 %3062, %v2329_v61  }
  0x4f   :  { %2339 = vperm.xlu0 %3061, %v2330_v62  }
  0x50   :  { %2882 = vmatmul.mubr.msk.f32.gmra.mxu1 %vm99_vm0, %v3368_v13 }
  0x51   :  { %2884 = vmatprep.mubr.msk.f32.mxu1 %vm99_vm0, %v3373_v14 }
  0x52   :  { %2344 = vperm.xlu1 %3062, %v2331_v63  }
  0x54   :  { %2885 = vmatmul.mubr.msk.f32.gmra.mxu1 %vm99_vm0, %v3392_v17 }
  0x55   :  { %2887 = vmatprep.mubr.msk.f32.mxu1 %vm99_vm0, %v3397_v18 }
  0x58   :  { %2888 = vmatmul.mubr.msk.f32.gmra.mxu1 %vm99_vm0, %v3416_v21 }
  0x59   :  { %2908 = vmatprep.mubr.msk.f32.mxu1 %vm999_vm1, %v3535_v40 }
  0xae   :  { %v3718_v23 = vpop.permute.xlu0 %66 }
  0xb2   :  { %v3722_v26 = vpop.permute.xlu1 %61 }
  0xb6   :  { %v3729_v31 = vpop.permute.xlu0 %76 }
  0xb9   :  { %v3732_v35 = vpop.permute.xlu1 %71 }
  0xba   :  { %v3736_v47 = vpop.permute.xlu0 %86 }
  0xbd   :  { %v3739_v57 = vpop.permute.xlu1 %81 }
  0xcb   :  { %v2740_v17 = vpop.f32.mrf.mxu1 }
  0xcc   :  { %v3676_v0 = vpop.f32.mrf.mxu0  ;;  %v196_v28 = vadd.f32 %v2740_v17, %v3718_v23 }
  0xcd   :  { %v190_v20 = vpop.f32.mrf.mxu1 }
  0xce   :  { %v3678_v1 = vpop.f32.mrf.mxu0  ;;  %v191_v34 = vadd.f32 %v190_v20, %v3722_v26 }
  0xcf   :  { %v2743_v24 = vpop.f32.mrf.mxu1 }
  0xd0   :  { %v3680_v2 = vpop.f32.mrf.mxu0  ;;  %v206_v39 = vadd.f32 %v2743_v24, %v3729_v31 }
  0xd1   :  { %v200_v29 = vpop.f32.mrf.mxu1 }
  0xd2   :  { %v3682_v3 = vpop.f32.mrf.mxu0  ;;  %v201_v46 = vadd.f32 %v200_v29, %v3732_v35  ;;  %v3742_v29 = vpop.permute.xlu0 %96 }
  0xd3   :  { %v2746_v37 = vpop.f32.mrf.mxu1 }
  0xd4   :  { %v3684_v4 = vpop.f32.mrf.mxu0  ;;  %v216_v56 = vadd.f32 %v2746_v37, %v3736_v47 }
  0xd5   :  { %v210_v52 = vpop.f32.mrf.mxu1 }
  0xd6   :  { %v3686_v5 = vpop.f32.mrf.mxu0  ;;  %v211_v62 = vadd.f32 %v210_v52, %v3739_v57 }
  0xd8   :  { %v3688_v6 = vpop.f32.mrf.mxu0  ;;  %v2749_v20 = vpop.f32.mrf.mxu1 }
  0xda   :  { %v3690_v7 = vpop.f32.mrf.mxu0  ;;  %v220_v37 = vpop.f32.mrf.mxu1 }
  0xdc   :  { %v3692_v8 = vpop.f32.mrf.mxu0 }
  0xde   :  { %v3694_v9 = vpop.f32.mrf.mxu0 }
  0xe0   :  { %v3696_v10 = vpop.f32.mrf.mxu0 }
  0xe2   :  { %v3698_v11 = vpop.f32.mrf.mxu0 }
  0xe4   :  { %v3700_v12 = vpop.f32.mrf.mxu0 }
  0xe6   :  { %v3702_v13 = vpop.f32.mrf.mxu0 }
  0xe8   :  { %v3704_v14 = vpop.f32.mrf.mxu0 }
  0xe9   :  { %4225 = vst [vmem:[#allocation6_spill] sm:$0xff] %v3704_v14 }
  0xea   :  { %v3706_v15 = vpop.f32.mrf.mxu0 }
  0xeb   :  { %4226 = vst [vmem:[#allocation7_spill] sm:$0xff] %v3706_v15 }
  0xec   :  { %v3708_v16 = vpop.f32.mrf.mxu0 }
  0xed   :  { %4227 = vst [vmem:[#allocation8_spill] sm:$0xff] %v3708_v16 }
  0xee   :  { %v3710_v18 = vpop.f32.mrf.mxu0 }
  0xef   :  { %4228 = vst [vmem:[#allocation9_spill] sm:$0xff] %v3710_v18 }
  0xf0   :  { %v3712_v19 = vpop.f32.mrf.mxu0 }
  0xf1   :  { %4229 = vst [vmem:[#allocation10_spill] sm:$0xff] %v3712_v19 }
  0xf2   :  { %v3714_v21 = vpop.f32.mrf.mxu0 }
  0xf3   :  { %4230 = vst [vmem:[#allocation11_spill] sm:$0xff] %v3714_v21 }
  0xf4   :  { %v3716_v22 = vpop.f32.mrf.mxu0 }
  0xf5   :  { %4231 = vst [vmem:[#allocation12_spill] sm:$0xff] %v3716_v22 }
  0xf6   :  { %v3720_v25 = vpop.f32.mrf.mxu0 }
  0xf7   :  { %4232 = vst [vmem:[#allocation13_spill] sm:$0xff] %v3720_v25 }
  0xf8   :  { %v3724_v27 = vpop.f32.mrf.mxu0 }
  0xf9   :  { %4233 = vst [vmem:[#allocation14_spill] sm:$0xff] %v3724_v27 }
  0xfa   :  { %v3727_v30 = vpop.f32.mrf.mxu0 }
  0xfb   :  { %4234 = vst [vmem:[#allocation15_spill] sm:$0xff] %v3727_v30 }
  0xfc   :  { %v2894_v32 = vpop.f32.mrf.mxu0 }
  0xfd   :  { %v1130_v36 = vadd.f32 %v2894_v32, %v196_v28 }
  0xfe   :  { %v1090_v38 = vpop.f32.mrf.mxu0 }
  0xff   :  { %v1138_v41 = vmul.f32 0.5, %v1130_v36  ;;  %v1129_v42 = vadd.f32 %v1090_v38, %v191_v34  ;;  %v226_v34 = vadd.f32 %v2749_v20, %v3742_v29  ;;  %v3745_v36 = vpop.permute.xlu1 %91 }
 0x100   :  { %v2897_v45 = vpop.f32.mrf.mxu0 }
 0x101   :  { %3063 = vtanh.f32 %v1138_v41  ;;  %v1137_v50 = vmul.f32 0.5, %v1129_v42  ;;  %v1132_v51 = vadd.f32 %v2897_v45, %v206_v39  ;;  %v221_v39 = vadd.f32 %v220_v37, %v3745_v36 }
 0x102   :  { %v1100_v55 = vpop.f32.mrf.mxu0 }
 0x103   :  { %3065 = vtanh.f32 %v1137_v50  ;;  %v1146_v59 = vmul.f32 0.5, %v1132_v51  ;;  %v1131_v60 = vadd.f32 %v1100_v55, %v201_v46 }
 0x104   :  { %v2900_v61 = vpop.f32.mrf.mxu0 }
 0x105   :  { %3067 = vtanh.f32 %v1146_v59  ;;  %v1145_v63 = vmul.f32 0.5, %v1131_v60  ;;  %v1134_v17 = vadd.f32 %v2900_v61, %v216_v56 }
 0x106   :  { %v1110_v24 = vpop.f32.mrf.mxu0 }
 0x107   :  { %3069 = vtanh.f32 %v1145_v63  ;;  %v1133_v28 = vadd.f32 %v1110_v24, %v211_v62 }
 0x108   :  { %3071 = vtanh.f32 %v1134_v17  ;;  %v2903_v32 = vpop.f32.mrf.mxu0 }
 0x109   :  { %3073 = vtanh.f32 %v1133_v28  ;;  %v1136_v41 = vadd.f32 %v2903_v32, %v226_v34 }
 0x10a   :  { %v1120_v38 = vpop.f32.mrf.mxu0 }
 0x10b   :  { %v1135_v42 = vadd.f32 %v1120_v38, %v221_v39  ;;  %v1156_v46 = vmul.f32 0.5, %v1136_v41 }
 0x10d   :  { %v1155_v52 = vmul.f32 0.5, %v1135_v42  ;;  %3075 = vtanh.f32 %v1156_v46 }
 0x10e   :  { %v3064_v45 = vpop.eup %3063 }
 0x10f   :  { %v1142_v51 = vadd.f32 1.0, %v3064_v45  ;;  %3077 = vtanh.f32 %v1155_v52 }
 0x110   :  { %v3066_v50 = vpop.eup %3065 }
 0x111   :  { %v1141_v56 = vadd.f32 1.0, %v3066_v50  ;;  %v1144_v62 = vmul.f32 0.5, %v1142_v51 }
 0x112   :  { %v3068_v55 = vpop.eup %3067 }
 0x113   :  { %v1150_v59 = vadd.f32 1.0, %v3068_v55  ;;  %v1143_v24 = vmul.f32 0.5, %v1141_v56 }
 0x114   :  { %v3070_v60 = vpop.eup %3069 }
 0x115   :  { %v3072_v61 = vpop.eup %3071  ;;  %v1152_v63 = vmul.f32 0.5, %v1150_v59  ;;  %v1149_v17 = vadd.f32 1.0, %v3070_v60 }
 0x116   :  { %v3074_v20 = vpop.eup %3073  ;;  %v1166_v34 = vmul.f32 %v3072_v61, %v1144_v62  ;;  %v2760_v61 = vpop.f32.mrf.mxu1 }
 0x117   :  { %v1164_v28 = vmul.f32 0.0, %v1152_v63  ;;  %v1151_v32 = vmul.f32 0.5, %v1149_v17  ;;  %v1165_v39 = vmul.f32 %v3074_v20, %v1143_v24 }
 0x118   :  { %v300_v62 = vpop.f32.mrf.mxu1 }
 0x119   :  { %v1163_v37 = vmul.f32 0.0, %v1151_v32  ;;  %v3748_v38 = vadd.f32 %v1166_v34, %v1164_v28 }
 0x11a   :  { %v3076_v42 = vpop.eup %3075  ;;  %v2763_v63 = vpop.f32.mrf.mxu1 }
 0x11b   :  { %v3750_v41 = vadd.f32 %v1165_v39, %v1163_v37  ;;  %3079 = vtanh.f32 %v3748_v38  ;;  %v1160_v46 = vadd.f32 1.0, %v3076_v42 }
 0x11c   :  { %v3078_v45 = vpop.eup %3077  ;;  %v310_v17 = vpop.f32.mrf.mxu1 }
 0x11d   :  { %3081 = vtanh.f32 %v3750_v41  ;;  %v1159_v50 = vadd.f32 1.0, %v3078_v45  ;;  %v1162_v51 = vmul.f32 0.5, %v1160_v46 }
 0x11e   :  { %v2766_v20 = vpop.f32.mrf.mxu1 }
 0x11f   :  { %v1161_v55 = vmul.f32 0.5, %v1159_v50 }
 0x120   :  { %v320_v24 = vpop.f32.mrf.mxu1 }
 0x122   :  { %v2769_v28 = vpop.f32.mrf.mxu1 }
 0x124   :  { %v330_v32 = vpop.f32.mrf.mxu1 }
 0x126   :  { %v3778_v34 = vpop.f32.mrf.mxu1 }
 0x128   :  { %v3080_v52 = vpop.eup %3079  ;;  %v3780_v37 = vpop.f32.mrf.mxu1 }
 0x129   :  { %v3754_v56 = vmul.f32 %v3080_v52, %v1162_v51 }
 0x12a   :  { %v3082_v59 = vpop.eup %3081  ;;  %v3782_v39 = vpop.f32.mrf.mxu1 }
 0x12b   :  { %4235 = vst [vmem:[#allocation16_spill] sm:$0xff] %v3754_v56  ;;  %2904 = vmatprep.subr.mxu1 %v3754_v56  ;;  %v3757_v60 = vmul.f32 %v3082_v59, %v1161_v55 }
 0x12c   :  { %2905 = vmatpush3.msra.mxu1 %v3754_v56  ;;  %v3784_v42 = vpop.f32.mrf.mxu1 }
 0x12d   :  { %4236 = vst [vmem:[#allocation17_spill] sm:$0xff] %v3757_v60  ;;  %2906 = vmatprep.subr.mxu1 %v3757_v60 }
 0x12e   :  { %2907 = vmatpush3.msra.mxu1 %v3757_v60  ;;  %v3786_v45 = vpop.f32.mrf.mxu1 }
 0x12f   :  { %2909 = vmatmul.mubr.msk.f32.vlgmr.msra.gmra.mxu1 %vm999_vm1, %v3552_v43 }
 0x130   :  { %2911 = vmatprep.mubr.msk.f32.mxu1 %vm999_vm1, %v3559_v44  ;;  %v3788_v46 = vpop.f32.mrf.mxu1 }
 0x132   :  { %v3790_v50 = vpop.f32.mrf.mxu1 }
 0x133   :  { %2912 = vmatmul.mubr.msk.f32.gmra.mxu1 %vm999_vm1, %v3581_v48 }
 0x134   :  { %2914 = vmatprep.mubr.msk.f32.mxu1 %vm999_vm1, %v3586_v49  ;;  %v3792_v51 = vpop.f32.mrf.mxu1 }
 0x136   :  { %v3794_v52 = vpop.f32.mrf.mxu1 }
 0x137   :  { %2915 = vmatmul.mubr.msk.f32.gmra.mxu1 %vm999_vm1, %v3608_v53  ;;  %4237 = vst [vmem:[#allocation18_spill] sm:$0xff] %v3794_v52 }
 0x138   :  { %2917 = vmatprep.mubr.msk.f32.mxu1 %vm999_vm1, %v3613_v54  ;;  %v3796_v55 = vpop.f32.mrf.mxu1 }
 0x139   :  { %4238 = vst [vmem:[#allocation19_spill] sm:$0xff] %v3796_v55 }
 0x13a   :  { %v3798_v59 = vpop.f32.mrf.mxu1 }
 0x13b   :  { %2918 = vmatmul.mubr.msk.f32.gmra.mxu1 %vm999_vm1, %v3635_v58  ;;  %4239 = vst [vmem:[#allocation20_spill] sm:$0xff] %v3798_v59 }
 0x13c   :  { %2940 = vmatprep.mubr.msk.f32.mxu1 %vm999_vm1, %v3535_v40  ;;  %v3800_v33 = vpop.f32.mrf.mxu1 }
 0x13d   :  { %4240 = vst [vmem:[#allocation21_spill] sm:$0xff] %v3800_v33 }
 0x13e   :  { %v3802_v60 = vpop.f32.mrf.mxu1 }
 0x13f   :  { %4241 = vst [vmem:[#allocation22_spill] sm:$0xff] %v3802_v60 }
 0x140   :  { %v3804_v56 = vpop.f32.mrf.mxu1 }
 0x141   :  { %4242 = vst [vmem:[#allocation23_spill] sm:$0xff] %v3804_v56 }
 0x142   :  { %v3806_v30 = vpop.f32.mrf.mxu1 }
 0x143   :  { %4243 = vst [vmem:[#allocation24_spill] sm:$0xff] %v3806_v30  ;;  %v306_v30 = vadd.f32 %v2760_v61, %v3718_v23 }
 0x144   :  { %v3808_v27 = vpop.f32.mrf.mxu1 }
 0x145   :  { %4244 = vst [vmem:[#allocation25_spill] sm:$0xff] %v3808_v27  ;;  %v301_v27 = vadd.f32 %v300_v62, %v3722_v26 }
 0x146   :  { %v3810_v25 = vpop.f32.mrf.mxu1 }
 0x147   :  { %4245 = vst [vmem:[#allocation26_spill] sm:$0xff] %v3810_v25 }
 0x148   :  { %v3812_v22 = vpop.f32.mrf.mxu1 }
 0x149   :  { %4246 = vst [vmem:[#allocation27_spill] sm:$0xff] %v3812_v22  ;;  %v316_v22 = vadd.f32 %v2763_v63, %v3729_v31 }
 0x14a   :  { %v3814_v21 = vpop.f32.mrf.mxu1 }
 0x14b   :  { %4247 = vst [vmem:[#allocation28_spill] sm:$0xff] %v3814_v21 }
 0x14c   :  { %v3816_v19 = vpop.f32.mrf.mxu1 }
 0x14d   :  { %4248 = vst [vmem:[#allocation29_spill] sm:$0xff] %v3816_v19 }
 0x14e   :  { %v3818_v18 = vpop.f32.mrf.mxu1 }
 0x14f   :  { %4249 = vst [vmem:[#allocation30_spill] sm:$0xff] %v3818_v18  ;;  %v311_v18 = vadd.f32 %v310_v17, %v3732_v35 }
 0x150   :  { %v3820_v16 = vpop.f32.mrf.mxu1 }
 0x151   :  { %4250 = vst [vmem:[#allocation31_spill] sm:$0xff] %v3820_v16 }
 0x152   :  { %v3822_v33 = vpop.f32.mrf.mxu1 }
 0x153   :  { %4251 = vst [vmem:[#allocation32_spill] sm:$0xff] %v3822_v33 }
 0x154   :  { %v3824_v60 = vpop.f32.mrf.mxu1 }
 0x155   :  { %4252 = vst [vmem:[#allocation33_spill] sm:$0xff] %v3824_v60  ;;  %v326_v60 = vadd.f32 %v2766_v20, %v3736_v47 }
 0x1ef   :  { %v2910_v56 = vpop.f32.mrf.mxu1 }
 0x1f0   :  { %v1279_v25 = vadd.f32 %v2910_v56, %v306_v30  ;;  %v321_v30 = vadd.f32 %v320_v24, %v3739_v57 }
 0x1f1   :  { %v1239_v59 = vpop.f32.mrf.mxu1 }
 0x1f2   :  { %v1287_v21 = vmul.f32 0.5, %v1279_v25  ;;  %v1278_v55 = vadd.f32 %v1239_v59, %v301_v27 }
 0x1f3   :  { %v2913_v19 = vpop.f32.mrf.mxu1 }
 0x1f4   :  { %3083 = vtanh.f32 %v1287_v21  ;;  %v1286_v16 = vmul.f32 0.5, %v1278_v55  ;;  %v1281_v52 = vadd.f32 %v2913_v19, %v316_v22  ;;  %v336_v21 = vadd.f32 %v2769_v28, %v3742_v29 }
 0x1f5   :  { %v1249_v33 = vpop.f32.mrf.mxu1  ;;  %v331_v22 = vadd.f32 %v330_v32, %v3745_v36 }
 0x1f6   :  { %3085 = vtanh.f32 %v1286_v16  ;;  %v1295_v61 = vmul.f32 0.5, %v1281_v52  ;;  %v1280_v15 = vadd.f32 %v1249_v33, %v311_v18 }
 0x1f7   :  { %v2916_v14 = vpop.f32.mrf.mxu1 }
 0x1f8   :  { %3087 = vtanh.f32 %v1295_v61  ;;  %v1294_v56 = vmul.f32 0.5, %v1280_v15  ;;  %v1283_v62 = vadd.f32 %v2916_v14, %v326_v60 }
 0x1f9   :  { %v1259_v25 = vpop.f32.mrf.mxu1 }
 0x1fa   :  { %3089 = vtanh.f32 %v1294_v56  ;;  %v1282_v27 = vadd.f32 %v1259_v25, %v321_v30 }
 0x1fb   :  { %3091 = vtanh.f32 %v1283_v62  ;;  %v2919_v63 = vpop.f32.mrf.mxu1 }
 0x1fc   :  { %3093 = vtanh.f32 %v1282_v27  ;;  %v1285_v16 = vadd.f32 %v2919_v63, %v336_v21 }
 0x1fd   :  { %v1269_v19 = vpop.f32.mrf.mxu1 }
 0x1fe   :  { %v1284_v17 = vadd.f32 %v1269_v19, %v331_v22  ;;  %v1305_v18 = vmul.f32 0.5, %v1285_v16 }
 0x200   :  { %v1304_v15 = vmul.f32 0.5, %v1284_v17  ;;  %3095 = vtanh.f32 %v1305_v18 }
 0x201   :  { %v3084_v33 = vpop.eup %3083 }
 0x202   :  { %v1291_v24 = vadd.f32 1.0, %v3084_v33  ;;  %3097 = vtanh.f32 %v1304_v15 }
 0x203   :  { %v3086_v20 = vpop.eup %3085 }
 0x204   :  { %v1290_v52 = vadd.f32 1.0, %v3086_v20  ;;  %v1293_v59 = vmul.f32 0.5, %v1291_v24 }
 0x205   :  { %v3088_v14 = vpop.eup %3087 }
 0x206   :  { %v1299_v60 = vadd.f32 1.0, %v3088_v14  ;;  %v1292_v30 = vmul.f32 0.5, %v1290_v52  ;;  %v416_v14 = vadd.f32 %v3676_v0, %v3718_v23  ;;  %v436_v0 = vadd.f32 %v3684_v4, %v3736_v47 }
 0x207   :  { %v3090_v55 = vpop.eup %3089 }
 0x208   :  { %v3092_v61 = vpop.eup %3091  ;;  %v1301_v28 = vmul.f32 0.5, %v1299_v60  ;;  %v1298_v56 = vadd.f32 1.0, %v3090_v55  ;;  %v411_v55 = vadd.f32 %v3678_v1, %v3722_v26 }
 0x209   :  { %v3094_v62 = vpop.eup %3093  ;;  %v1315_v32 = vmul.f32 %v3092_v61, %v1293_v59 }
 0x20a   :  { %v1313_v25 = vmul.f32 %v1301_v28, %v3748_v38  ;;  %v1300_v27 = vmul.f32 0.5, %v1298_v56  ;;  %v1314_v63 = vmul.f32 %v3094_v62, %v1292_v30  ;;  %v426_v30 = vadd.f32 %v3680_v2, %v3729_v31 }
 0x20b   :  { %v431_v2 = vadd.f32 %v3686_v5, %v3739_v57 }
 0x20c   :  { %v1312_v21 = vmul.f32 %v1300_v27, %v3750_v41  ;;  %v3836_v19 = vadd.f32 %v1315_v32, %v1313_v25  ;;  %v421_v32 = vadd.f32 %v3682_v3, %v3732_v35 }
 0x20d   :  { %v3096_v16 = vpop.eup %3095 }
 0x20e   :  { %v3838_v22 = vadd.f32 %v1314_v63, %v1312_v21  ;;  %3099 = vtanh.f32 %v3836_v19  ;;  %v1309_v33 = vadd.f32 1.0, %v3096_v16 }
 0x20f   :  { %v3098_v17 = vpop.eup %3097 }
 0x210   :  { %3101 = vtanh.f32 %v3838_v22  ;;  %v1308_v18 = vadd.f32 1.0, %v3098_v17  ;;  %v1311_v20 = vmul.f32 0.5, %v1309_v33 }
 0x212   :  { %v1310_v52 = vmul.f32 0.5, %v1308_v18 }
 0x21b   :  { %v3100_v24 = vpop.eup %3099 }
 0x21c   :  { %v3842_v38 = vmul.f32 %v3100_v24, %v1311_v20  ;;  %v446_v24 = vadd.f32 %v3688_v6, %v3742_v29 }
 0x21d   :  { %v3102_v15 = vpop.eup %3101 }
 0x21e   :  { %2920 = vmatprep.subr.mxu0 %v3842_v38  ;;  %v3845_v41 = vmul.f32 %v3102_v15, %v1310_v52  ;;  %v441_v52 = vadd.f32 %v3690_v7, %v3745_v36 }
 0x21f   :  { %2921 = vmatpush3.msra.mxu0 %v3842_v38 }
 0x220   :  { %2922 = vmatprep.subr.mxu0 %v3845_v41 }
 0x221   :  { %2923 = vmatpush3.msra.mxu0 %v3845_v41 }
 0x222   :  { %2925 = vmatmul.mubr.msk.f32.vlgmr.msra.gmra.mxu0 %vm999_vm1, %v3552_v43 }
 0x223   :  { %2927 = vmatprep.mubr.msk.f32.mxu0 %vm999_vm1, %v3559_v44 }
 0x226   :  { %2928 = vmatmul.mubr.msk.f32.gmra.mxu0 %vm999_vm1, %v3581_v48 }
 0x227   :  { %2930 = vmatprep.mubr.msk.f32.mxu0 %vm999_vm1, %v3586_v49 }
 0x22a   :  { %2931 = vmatmul.mubr.msk.f32.gmra.mxu0 %vm999_vm1, %v3608_v53 }
 0x22b   :  { %2933 = vmatprep.mubr.msk.f32.mxu0 %vm999_vm1, %v3613_v54 }
 0x22e   :  { %2934 = vmatmul.mubr.msk.f32.gmra.mxu0 %vm999_vm1, %v3635_v58 }
 0x22f   :  { %2956 = vmatprep.mubr.msk.f32.mxu0 %vm999_vm1, %v3535_v40 }
 0x2e2   :  { %v2926_v60 = vpop.f32.mrf.mxu0 }
 0x2e3   :  { %v1428_v59 = vadd.f32 %v2926_v60, %v416_v14 }
 0x2e4   :  { %v1388_v61 = vpop.f32.mrf.mxu0 }
 0x2e5   :  { %v1436_v28 = vmul.f32 0.5, %v1428_v59  ;;  %v1427_v56 = vadd.f32 %v1388_v61, %v411_v55 }
 0x2e6   :  { %v2929_v62 = vpop.f32.mrf.mxu0 }
 0x2e7   :  { %3103 = vtanh.f32 %v1436_v28  ;;  %v1435_v25 = vmul.f32 0.5, %v1427_v56  ;;  %v1430_v27 = vadd.f32 %v2929_v62, %v426_v30 }
 0x2e8   :  { %v1398_v63 = vpop.f32.mrf.mxu0 }
 0x2e9   :  { %3105 = vtanh.f32 %v1435_v25  ;;  %v1444_v1 = vmul.f32 0.5, %v1430_v27  ;;  %v1429_v21 = vadd.f32 %v1398_v63, %v421_v32 }
 0x2ea   :  { %v2932_v16 = vpop.f32.mrf.mxu0 }
 0x2eb   :  { %3107 = vtanh.f32 %v1444_v1  ;;  %v1443_v17 = vmul.f32 0.5, %v1429_v21  ;;  %v1432_v33 = vadd.f32 %v2932_v16, %v436_v0 }
 0x2ec   :  { %v1408_v18 = vpop.f32.mrf.mxu0 }
 0x2ed   :  { %3109 = vtanh.f32 %v1443_v17  ;;  %v1431_v3 = vadd.f32 %v1408_v18, %v431_v2 }
 0x2ee   :  { %3111 = vtanh.f32 %v1432_v33  ;;  %v2935_v20 = vpop.f32.mrf.mxu0 }
 0x2ef   :  { %3113 = vtanh.f32 %v1431_v3  ;;  %v1434_v15 = vadd.f32 %v2935_v20, %v446_v24 }
 0x2f0   :  { %v1418_v4 = vpop.f32.mrf.mxu0 }
 0x2f1   :  { %v1433_v14 = vadd.f32 %v1418_v4, %v441_v52  ;;  %v1454_v5 = vmul.f32 0.5, %v1434_v15 }
 0x2f3   :  { %v1453_v30 = vmul.f32 0.5, %v1433_v14  ;;  %3115 = vtanh.f32 %v1454_v5 }
 0x2f4   :  { %v3104_v60 = vpop.eup %3103 }
 0x2f5   :  { %v1440_v59 = vadd.f32 1.0, %v3104_v60  ;;  %3117 = vtanh.f32 %v1453_v30  ;;  %v526_v60 = vadd.f32 %v3778_v34, %v3718_v23  ;;  %v536_v30 = vadd.f32 %v3782_v39, %v3729_v31 }
 0x2f6   :  { %v3106_v55 = vpop.eup %3105  ;;  %v546_v34 = vadd.f32 %v3786_v45, %v3736_v47  ;;  %v541_v39 = vadd.f32 %v3788_v46, %v3739_v57 }
 0x2f7   :  { %v1439_v61 = vadd.f32 1.0, %v3106_v55  ;;  %v1442_v32 = vmul.f32 0.5, %v1440_v59  ;;  %v521_v55 = vadd.f32 %v3780_v37, %v3722_v26 }
 0x2f8   :  { %v3108_v28 = vpop.eup %3107 }
 0x2f9   :  { %v1448_v56 = vadd.f32 1.0, %v3108_v28  ;;  %v1441_v6 = vmul.f32 0.5, %v1439_v61 }
 0x2fa   :  { %v3110_v62 = vpop.eup %3109 }
 0x2fb   :  { %v3112_v25 = vpop.eup %3111  ;;  %v1450_v27 = vmul.f32 0.5, %v1448_v56  ;;  %v1447_v63 = vadd.f32 1.0, %v3110_v62 }
 0x2fc   :  { %v3114_v0 = vpop.eup %3113  ;;  %v1464_v7 = vmul.f32 %v3112_v25, %v1442_v32  ;;  %v531_v32 = vadd.f32 %v3784_v42, %v3732_v35 }
 0x2fd   :  { %v1462_v1 = vmul.f32 %v1450_v27, %v3836_v19  ;;  %v1449_v21 = vmul.f32 0.5, %v1447_v63  ;;  %v1463_v16 = vmul.f32 %v3114_v0, %v1441_v6 }
 0x2ff   :  { %v1461_v2 = vmul.f32 %v1449_v21, %v3838_v22  ;;  %v3884_v17 = vadd.f32 %v1464_v7, %v1462_v1 }
 0x300   :  { %v3116_v18 = vpop.eup %3115 }
 0x301   :  { %v3886_v33 = vadd.f32 %v1463_v16, %v1461_v2  ;;  %3119 = vtanh.f32 %v3884_v17  ;;  %v1458_v20 = vadd.f32 1.0, %v3116_v18  ;;  %v556_v2 = vadd.f32 %v3790_v50, %v3742_v29 }
 0x302   :  { %v3118_v3 = vpop.eup %3117  ;;  %v551_v18 = vadd.f32 %v3792_v51, %v3745_v36 }
 0x303   :  { %3121 = vtanh.f32 %v3886_v33  ;;  %v1457_v24 = vadd.f32 1.0, %v3118_v3  ;;  %v1460_v4 = vmul.f32 0.5, %v1458_v20 }
 0x305   :  { %v1459_v15 = vmul.f32 0.5, %v1457_v24 }
 0x30e   :  { %v3120_v52 = vpop.eup %3119 }
 0x30f   :  { %v3890_v19 = vmul.f32 %v3120_v52, %v1460_v4 }
 0x310   :  { %v3122_v14 = vpop.eup %3121 }
 0x311   :  { %2936 = vmatprep.subr.mxu1 %v3890_v19  ;;  %v3893_v22 = vmul.f32 %v3122_v14, %v1459_v15 }
 0x312   :  { %2937 = vmatpush3.msra.mxu1 %v3890_v19 }
 0x313   :  { %2938 = vmatprep.subr.mxu1 %v3893_v22 }
 0x314   :  { %2939 = vmatpush3.msra.mxu1 %v3893_v22 }
 0x315   :  { %2941 = vmatmul.mubr.msk.f32.vlgmr.msra.gmra.mxu1 %vm999_vm1, %v3552_v43 }
 0x316   :  { %2943 = vmatprep.mubr.msk.f32.mxu1 %vm999_vm1, %v3559_v44 }
 0x319   :  { %2944 = vmatmul.mubr.msk.f32.gmra.mxu1 %vm999_vm1, %v3581_v48 }
 0x31a   :  { %2946 = vmatprep.mubr.msk.f32.mxu1 %vm999_vm1, %v3586_v49 }
 0x31d   :  { %2947 = vmatmul.mubr.msk.f32.gmra.mxu1 %vm999_vm1, %v3608_v53 }
 0x31e   :  { %2949 = vmatprep.mubr.msk.f32.mxu1 %vm999_vm1, %v3613_v54 }
 0x321   :  { %2950 = vmatmul.mubr.msk.f32.gmra.mxu1 %vm999_vm1, %v3635_v58 }
 0x322   :  { %2972 = vmatprep.mubr.msk.f32.mxu1 %vm999_vm1, %v3535_v40 }
 0x3d5   :  { %v2942_v5 = vpop.f32.mrf.mxu1 }
 0x3d6   :  { %v1577_v59 = vadd.f32 %v2942_v5, %v526_v60 }
 0x3d7   :  { %v1537_v61 = vpop.f32.mrf.mxu1 }
 0x3d8   :  { %v1585_v28 = vmul.f32 0.5, %v1577_v59  ;;  %v1576_v56 = vadd.f32 %v1537_v61, %v521_v55 }
 0x3d9   :  { %v2945_v62 = vpop.f32.mrf.mxu1 }
 0x3da   :  { %3123 = vtanh.f32 %v1585_v28  ;;  %v1584_v25 = vmul.f32 0.5, %v1576_v56  ;;  %v1579_v6 = vadd.f32 %v2945_v62, %v536_v30 }
 0x3db   :  { %v1547_v27 = vpop.f32.mrf.mxu1 }
 0x3dc   :  { %3125 = vtanh.f32 %v1584_v25  ;;  %v1593_v37 = vmul.f32 0.5, %v1579_v6  ;;  %v1578_v63 = vadd.f32 %v1547_v27, %v531_v32 }
 0x3dd   :  { %v2948_v0 = vpop.f32.mrf.mxu1 }
 0x3de   :  { %3127 = vtanh.f32 %v1593_v37  ;;  %v1592_v7 = vmul.f32 0.5, %v1578_v63  ;;  %v1581_v1 = vadd.f32 %v2948_v0, %v546_v34 }
 0x3df   :  { %v1557_v21 = vpop.f32.mrf.mxu1 }
 0x3e0   :  { %3129 = vtanh.f32 %v1592_v7  ;;  %v1580_v42 = vadd.f32 %v1557_v21, %v541_v39 }
 0x3e1   :  { %3131 = vtanh.f32 %v1581_v1  ;;  %v2951_v16 = vpop.f32.mrf.mxu1 }
 0x3e2   :  { %3133 = vtanh.f32 %v1580_v42  ;;  %v1583_v3 = vadd.f32 %v2951_v16, %v556_v2 }
 0x3e3   :  { %v1567_v45 = vpop.f32.mrf.mxu1 }
 0x3e4   :  { %v1582_v20 = vadd.f32 %v1567_v45, %v551_v18  ;;  %v1603_v46 = vmul.f32 0.5, %v1583_v3  ;;  %v641_v18 = vadd.f32 %v3698_v11, %v3732_v35 }
 0x3e6   :  { %v1602_v14 = vmul.f32 0.5, %v1582_v20  ;;  %3135 = vtanh.f32 %v1603_v46 }
 0x3e7   :  { %v3124_v24 = vpop.eup %3123 }
 0x3e8   :  { %v1589_v52 = vadd.f32 1.0, %v3124_v24  ;;  %3137 = vtanh.f32 %v1602_v14 }
 0x3e9   :  { %v3126_v4 = vpop.eup %3125 }
 0x3ea   :  { %v1588_v15 = vadd.f32 1.0, %v3126_v4  ;;  %v1591_v59 = vmul.f32 0.5, %v1589_v52 }
 0x3eb   :  { %v3128_v60 = vpop.eup %3127 }
 0x3ec   :  { %v1597_v5 = vadd.f32 1.0, %v3128_v60  ;;  %v1590_v50 = vmul.f32 0.5, %v1588_v15  ;;  %v4253_v60 = vld [vmem:[#allocation6_spill] sm:$0xff] }
 0x3ed   :  { %v3130_v55 = vpop.eup %3129 }
 0x3ee   :  { %v3132_v61 = vpop.eup %3131  ;;  %v1599_v30 = vmul.f32 0.5, %v1597_v5  ;;  %v1596_v28 = vadd.f32 1.0, %v3130_v55  ;;  %v666_v5 = vadd.f32 %v4253_v60, %v3742_v29  ;;  %v4254_v55 = vld [vmem:[#allocation7_spill] sm:$0xff] }
 0x3ef   :  { %v3134_v56 = vpop.eup %3133  ;;  %v1613_v51 = vmul.f32 %v3132_v61, %v1591_v59  ;;  %v661_v59 = vadd.f32 %v4254_v55, %v3745_v36  ;;  %v4256_v60 = vld [vmem:[#allocation19_spill] sm:$0xff] }
 0x3f0   :  { %v1611_v62 = vmul.f32 %v1599_v30, %v3884_v17  ;;  %v1598_v32 = vmul.f32 0.5, %v1596_v28  ;;  %v1612_v25 = vmul.f32 %v3134_v56, %v1590_v50 }
 0x3f2   :  { %v1610_v6 = vmul.f32 %v1598_v32, %v3886_v33  ;;  %v3932_v27 = vadd.f32 %v1613_v51, %v1611_v62 }
 0x3f3   :  { %v3136_v37 = vpop.eup %3135 }
 0x3f4   :  { %v3934_v34 = vadd.f32 %v1612_v25, %v1610_v6  ;;  %3139 = vtanh.f32 %v3932_v27  ;;  %v1607_v0 = vadd.f32 1.0, %v3136_v37 }
 0x3f5   :  { %v3138_v63 = vpop.eup %3137 }
 0x3f6   :  { %3141 = vtanh.f32 %v3934_v34  ;;  %v1606_v39 = vadd.f32 1.0, %v3138_v63  ;;  %v1609_v7 = vmul.f32 0.5, %v1607_v0 }
 0x3f8   :  { %v1608_v21 = vmul.f32 0.5, %v1606_v39 }
 0x401   :  { %v3140_v1 = vpop.eup %3139 }
 0x402   :  { %v3938_v17 = vmul.f32 %v3140_v1, %v1609_v7 }
 0x403   :  { %v3142_v42 = vpop.eup %3141 }
 0x404   :  { %2952 = vmatprep.subr.mxu0 %v3938_v17  ;;  %v3941_v33 = vmul.f32 %v3142_v42, %v1608_v21 }
 0x405   :  { %2953 = vmatpush3.msra.mxu0 %v3938_v17 }
 0x406   :  { %2954 = vmatprep.subr.mxu0 %v3941_v33 }
 0x407   :  { %2955 = vmatpush3.msra.mxu0 %v3941_v33 }
 0x408   :  { %2957 = vmatmul.mubr.msk.f32.vlgmr.msra.gmra.mxu0 %vm999_vm1, %v3552_v43  ;;  %v636_v43 = vadd.f32 %v3692_v8, %v3718_v23  ;;  %v656_v8 = vadd.f32 %v3700_v12, %v3736_v47 }
 0x409   :  { %2959 = vmatprep.mubr.msk.f32.mxu0 %vm999_vm1, %v3559_v44 }
 0x40c   :  { %2960 = vmatmul.mubr.msk.f32.gmra.mxu0 %vm999_vm1, %v3581_v48  ;;  %v631_v48 = vadd.f32 %v3694_v9, %v3722_v26 }
 0x40d   :  { %2962 = vmatprep.mubr.msk.f32.mxu0 %vm999_vm1, %v3586_v49 }
 0x410   :  { %2963 = vmatmul.mubr.msk.f32.gmra.mxu0 %vm999_vm1, %v3608_v53  ;;  %v646_v53 = vadd.f32 %v3696_v10, %v3729_v31  ;;  %v651_v10 = vadd.f32 %v3702_v13, %v3739_v57 }
 0x411   :  { %2965 = vmatprep.mubr.msk.f32.mxu0 %vm999_vm1, %v3613_v54 }
 0x414   :  { %2966 = vmatmul.mubr.msk.f32.gmra.mxu0 %vm999_vm1, %v3635_v58 }
 0x415   :  { %2988 = vmatprep.mubr.msk.f32.mxu0 %vm999_vm1, %v3535_v40 }
 0x4c8   :  { %v2958_v44 = vpop.f32.mrf.mxu0 }
 0x4c9   :  { %v1726_v49 = vadd.f32 %v2958_v44, %v636_v43 }
 0x4ca   :  { %v1686_v16 = vpop.f32.mrf.mxu0 }
 0x4cb   :  { %v1734_v2 = vmul.f32 0.5, %v1726_v49  ;;  %v1725_v54 = vadd.f32 %v1686_v16, %v631_v48 }
 0x4cc   :  { %v2961_v45 = vpop.f32.mrf.mxu0 }
 0x4cd   :  { %3143 = vtanh.f32 %v1734_v2  ;;  %v1733_v40 = vmul.f32 0.5, %v1725_v54  ;;  %v1728_v3 = vadd.f32 %v2961_v45, %v646_v53 }
 0x4ce   :  { %v1696_v20 = vpop.f32.mrf.mxu0 }
 0x4cf   :  { %3145 = vtanh.f32 %v1733_v40  ;;  %v1742_v9 = vmul.f32 0.5, %v1728_v3  ;;  %v1727_v24 = vadd.f32 %v1696_v20, %v641_v18 }
 0x4d0   :  { %v2964_v46 = vpop.f32.mrf.mxu0 }
 0x4d1   :  { %3147 = vtanh.f32 %v1742_v9  ;;  %v1741_v4 = vmul.f32 0.5, %v1727_v24  ;;  %v1730_v52 = vadd.f32 %v2964_v46, %v656_v8  ;;  %v3997_v8 = vld [vmem:[%s4214_s2 + $0x8] sm:$0xff]  ;;  %v4004_v9 = vld [vmem:[%s4214_s2 + $0x10] sm:$0xff]  ;;  %v4011_v24 = vld [vmem:[%s4214_s2 + $0x18] sm:$0xff] }
 0x4d2   :  { %v1706_v15 = vpop.f32.mrf.mxu0  ;;  %v4018_v46 = vld [vmem:[%s4214_s2 + $0x20] sm:$0xff] }
 0x4d3   :  { %3149 = vtanh.f32 %v1741_v4  ;;  %v1729_v11 = vadd.f32 %v1706_v15, %v651_v10  ;;  %v4025_v10 = vld [vmem:[%s4214_s2 + $0x28] sm:$0xff]  ;;  %v4032_v4 = vld [vmem:[%s4214_s2 + $0x30] sm:$0xff] }
 0x4d4   :  { %3151 = vtanh.f32 %v1730_v52  ;;  %v2967_v14 = vpop.f32.mrf.mxu0  ;;  %v3235_v52 = vld [vmem:[%s4214_s2] sm:$0xff] }
 0x4d5   :  { %3153 = vtanh.f32 %v1729_v11  ;;  %v1732_v61 = vadd.f32 %v2967_v14, %v666_v5  ;;  %v4255_v15 = vld [vmem:[#allocation18_spill] sm:$0xff]  ;;  %v741_v5 = vadd.f32 %v4256_v60, %v3722_v26 }
 0x4d6   :  { %v1716_v12 = vpop.f32.mrf.mxu0  ;;  %v746_v11 = vadd.f32 %v4255_v15, %v3718_v23 }
 0x4d7   :  { %v1731_v50 = vadd.f32 %v1716_v12, %v661_v59  ;;  %v1752_v13 = vmul.f32 0.5, %v1732_v61  ;;  %v4257_v59 = vld [vmem:[#allocation20_spill] sm:$0xff] }
 0x4d8   :  { %v756_v61 = vadd.f32 %v4257_v59, %v3729_v31 }
 0x4d9   :  { %v1751_v62 = vmul.f32 0.5, %v1731_v50  ;;  %3155 = vtanh.f32 %v1752_v13  ;;  %v4258_v13 = vld [vmem:[#allocation21_spill] sm:$0xff] }
 0x4da   :  { %v3144_v30 = vpop.eup %3143 }
 0x4db   :  { %v1738_v56 = vadd.f32 1.0, %v3144_v30  ;;  %3157 = vtanh.f32 %v1751_v62 }
 0x4dc   :  { %v3146_v28 = vpop.eup %3145 }
 0x4dd   :  { %v1737_v51 = vadd.f32 1.0, %v3146_v28  ;;  %v1740_v37 = vmul.f32 0.5, %v1738_v56  ;;  %v751_v28 = vadd.f32 %v4258_v13, %v3732_v35 }
 0x4de   :  { %v3148_v32 = vpop.eup %3147 }
 0x4df   :  { %v1746_v25 = vadd.f32 1.0, %v3148_v32  ;;  %v1739_v0 = vmul.f32 0.5, %v1737_v51  ;;  %v4259_v32 = vld [vmem:[#allocation22_spill] sm:$0xff] }
 0x4e0   :  { %v3150_v6 = vpop.eup %3149 }
 0x4e1   :  { %v3152_v63 = vpop.eup %3151  ;;  %v1748_v39 = vmul.f32 0.5, %v1746_v25  ;;  %v1745_v7 = vadd.f32 1.0, %v3150_v6  ;;  %v766_v25 = vadd.f32 %v4259_v32, %v3736_v47 }
 0x4e2   :  { %v3154_v1 = vpop.eup %3153  ;;  %v1762_v21 = vmul.f32 %v3152_v63, %v1740_v37 }
 0x4e3   :  { %v1760_v42 = vmul.f32 %v1748_v39, %v3932_v27  ;;  %v1747_v43 = vmul.f32 0.5, %v1745_v7  ;;  %v1761_v44 = vmul.f32 %v3154_v1, %v1739_v0  ;;  %v4260_v0 = vld [vmem:[#allocation23_spill] sm:$0xff] }
 0x4e4   :  { %v761_v39 = vadd.f32 %v4260_v0, %v3739_v57 }
 0x4e5   :  { %v1759_v48 = vmul.f32 %v1747_v43, %v3934_v34  ;;  %v3980_v49 = vadd.f32 %v1762_v21, %v1760_v42 }
 0x4e6   :  { %v3156_v53 = vpop.eup %3155 }
 0x4e7   :  { %v3982_v16 = vadd.f32 %v1761_v44, %v1759_v48  ;;  %3159 = vtanh.f32 %v3980_v49  ;;  %v1756_v54 = vadd.f32 1.0, %v3156_v53  ;;  %v4261_v44 = vld [vmem:[#allocation24_spill] sm:$0xff] }
 0x4e8   :  { %v3158_v2 = vpop.eup %3157  ;;  %v776_v48 = vadd.f32 %v4261_v44, %v3742_v29 }
 0x4e9   :  { %3161 = vtanh.f32 %v3982_v16  ;;  %v1755_v45 = vadd.f32 1.0, %v3158_v2  ;;  %v1758_v18 = vmul.f32 0.5, %v1756_v54  ;;  %v4262_v2 = vld [vmem:[#allocation25_spill] sm:$0xff] }
 0x4ea   :  { %v771_v54 = vadd.f32 %v4262_v2, %v3745_v36 }
 0x4eb   :  { %v1757_v3 = vmul.f32 0.5, %v1755_v45 }
 0x4f4   :  { %v3160_v40 = vpop.eup %3159 }
 0x4f5   :  { %v3986_v27 = vmul.f32 %v3160_v40, %v1758_v18 }
 0x4f6   :  { %v3162_v20 = vpop.eup %3161 }
 0x4f7   :  { %2968 = vmatprep.subr.mxu1 %v3986_v27  ;;  %v3989_v34 = vmul.f32 %v3162_v20, %v1757_v3 }
 0x4f8   :  { %2969 = vmatpush3.msra.mxu1 %v3986_v27 }
 0x4f9   :  { %2970 = vmatprep.subr.mxu1 %v3989_v34 }
 0x4fa   :  { %2971 = vmatpush3.msra.mxu1 %v3989_v34 }
 0x4fb   :  { %2973 = vmatmul.mubr.msk.f32.vlgmr.msra.gmra.mxu1 %vm999_vm1, %v3997_v8 }
 0x4fc   :  { %2975 = vmatprep.mubr.msk.f32.mxu1 %vm999_vm1, %v4004_v9 }
 0x4ff   :  { %2976 = vmatmul.mubr.msk.f32.gmra.mxu1 %vm999_vm1, %v4011_v24 }
 0x500   :  { %2978 = vmatprep.mubr.msk.f32.mxu1 %vm999_vm1, %v4018_v46 }
 0x503   :  { %2979 = vmatmul.mubr.msk.f32.gmra.mxu1 %vm999_vm1, %v4025_v10 }
 0x504   :  { %2981 = vmatprep.mubr.msk.f32.mxu1 %vm999_vm1, %v4032_v4 }
 0x507   :  { %2982 = vmatmul.mubr.msk.f32.gmra.mxu1 %vm999_vm1, %v3635_v58 }
 0x508   :  { %3004 = vmatprep.mubr.msk.f32.mxu1 %vm999_vm1, %v3235_v52 }
 0x5bb   :  { %v2974_v14 = vpop.f32.mrf.mxu1 }
 0x5bc   :  { %v1875_v12 = vadd.f32 %v2974_v14, %v746_v11 }
 0x5bd   :  { %v1835_v55 = vpop.f32.mrf.mxu1 }
 0x5be   :  { %v1883_v50 = vmul.f32 0.5, %v1875_v12  ;;  %v1874_v58 = vadd.f32 %v1835_v55, %v741_v5 }
 0x5bf   :  { %v2977_v30 = vpop.f32.mrf.mxu1 }
 0x5c0   :  { %3163 = vtanh.f32 %v1883_v50  ;;  %v1882_v56 = vmul.f32 0.5, %v1874_v58  ;;  %v1877_v51 = vadd.f32 %v2977_v30, %v756_v61 }
 0x5c1   :  { %v1845_v62 = vpop.f32.mrf.mxu1 }
 0x5c2   :  { %3165 = vtanh.f32 %v1882_v56  ;;  %v1891_v6 = vmul.f32 0.5, %v1877_v51  ;;  %v1876_v37 = vadd.f32 %v1845_v62, %v751_v28 }
 0x5c3   :  { %v2980_v63 = vpop.f32.mrf.mxu1 }
 0x5c4   :  { %3167 = vtanh.f32 %v1891_v6  ;;  %v1890_v7 = vmul.f32 0.5, %v1876_v37  ;;  %v1879_v1 = vadd.f32 %v2980_v63, %v766_v25 }
 0x5c5   :  { %v1855_v21 = vpop.f32.mrf.mxu1 }
 0x5c6   :  { %3169 = vtanh.f32 %v1890_v7  ;;  %v1878_v42 = vadd.f32 %v1855_v21, %v761_v39  ;;  %v4263_v21 = vmov 0.0  }
 0x5c7   :  { %3171 = vtanh.f32 %v1879_v1  ;;  %v2983_v43 = vpop.f32.mrf.mxu1 }
 0x5c8   :  { %3173 = vtanh.f32 %v1878_v42  ;;  %v1881_v45 = vadd.f32 %v2983_v43, %v776_v48  ;;  %v4090_v42 = vld [vmem:[%s4214_s2 + $0x38] sm:$0xff] }
 0x5c9   :  { %v1865_v53 = vpop.f32.mrf.mxu1  ;;  %v4264_v43 = vld [vmem:[#allocation8_spill] sm:$0xff] }
 0x5ca   :  { %v1880_v18 = vadd.f32 %v1865_v53, %v771_v54  ;;  %v1901_v3 = vmul.f32 0.5, %v1881_v45  ;;  %v856_v44 = vadd.f32 %v4264_v43, %v3718_v23  ;;  %v4265_v53 = vld [vmem:[#allocation9_spill] sm:$0xff] }
 0x5cb   :  { %v851_v2 = vadd.f32 %v4265_v53, %v3722_v26 }
 0x5cc   :  { %v1900_v11 = vmul.f32 0.5, %v1880_v18  ;;  %3175 = vtanh.f32 %v1901_v3  ;;  %v4266_v18 = vld [vmem:[#allocation10_spill] sm:$0xff] }
 0x5cd   :  { %v3164_v40 = vpop.eup %3163 }
 0x5ce   :  { %v1887_v52 = vadd.f32 1.0, %v3164_v40  ;;  %3177 = vtanh.f32 %v1900_v11  ;;  %v866_v40 = vadd.f32 %v4266_v18, %v3729_v31 }
 0x5cf   :  { %v3166_v20 = vpop.eup %3165 }
 0x5d0   :  { %v1886_v15 = vadd.f32 1.0, %v3166_v20  ;;  %v1889_v12 = vmul.f32 0.5, %v1887_v52 }
 0x5d1   :  { %v3168_v14 = vpop.eup %3167 }
 0x5d2   :  { %v1895_v60 = vadd.f32 1.0, %v3168_v14  ;;  %v1888_v59 = vmul.f32 0.5, %v1886_v15  ;;  %v4267_v15 = vld [vmem:[#allocation11_spill] sm:$0xff] }
 0x5d3   :  { %v3170_v5 = vpop.eup %3169  ;;  %v861_v11 = vadd.f32 %v4267_v15, %v3732_v35 }
 0x5d4   :  { %v3172_v55 = vpop.eup %3171  ;;  %v1897_v61 = vmul.f32 0.5, %v1895_v60  ;;  %v1894_v50 = vadd.f32 1.0, %v3170_v5 }
 0x5d5   :  { %v3174_v58 = vpop.eup %3173  ;;  %v1911_v30 = vmul.f32 %v3172_v55, %v1889_v12  ;;  %v4268_v12 = vld [vmem:[#allocation12_spill] sm:$0xff] }
 0x5d6   :  { %v1909_v13 = vmul.f32 %v1897_v61, %v3980_v49  ;;  %v1896_v28 = vmul.f32 0.5, %v1894_v50  ;;  %v1910_v56 = vmul.f32 %v3174_v58, %v1888_v59  ;;  %v876_v55 = vadd.f32 %v4268_v12, %v3736_v47  ;;  %v4269_v58 = vld [vmem:[#allocation13_spill] sm:$0xff] }
 0x5d8   :  { %v1908_v51 = vmul.f32 %v1896_v28, %v3982_v16  ;;  %v4060_v62 = vadd.f32 %v1911_v30, %v1909_v13  ;;  %v871_v30 = vadd.f32 %v4269_v58, %v3739_v57 }
 0x5d9   :  { %v3176_v25 = vpop.eup %3175 }
 0x5da   :  { %v4062_v32 = vadd.f32 %v1910_v56, %v1908_v51  ;;  %3179 = vtanh.f32 %v4060_v62  ;;  %v1905_v37 = vadd.f32 1.0, %v3176_v25 }
 0x5db   :  { %v3178_v6 = vpop.eup %3177 }
 0x5dc   :  { %3181 = vtanh.f32 %v4062_v32  ;;  %v1904_v63 = vadd.f32 1.0, %v3178_v6  ;;  %v1907_v0 = vmul.f32 0.5, %v1905_v37  ;;  %v4270_v6 = vld [vmem:[#allocation14_spill] sm:$0xff] }
 0x5dd   :  { %v886_v37 = vadd.f32 %v4270_v6, %v3742_v29 }
 0x5de   :  { %v1906_v7 = vmul.f32 0.5, %v1904_v63 }
 0x5e7   :  { %v3180_v39 = vpop.eup %3179 }
 0x5e8   :  { %v4066_v49 = vmul.f32 %v3180_v39, %v1907_v0  ;;  %v4271_v0 = vld [vmem:[#allocation15_spill] sm:$0xff] }
 0x5e9   :  { %v3182_v1 = vpop.eup %3181  ;;  %v881_v39 = vadd.f32 %v4271_v0, %v3745_v36 }
 0x5ea   :  { %2984 = vmatprep.subr.mxu0 %v4066_v49  ;;  %v4069_v16 = vmul.f32 %v3182_v1, %v1906_v7 }
 0x5eb   :  { %2985 = vmatpush3.msra.mxu0 %v4066_v49 }
 0x5ec   :  { %2986 = vmatprep.subr.mxu0 %v4069_v16 }
 0x5ed   :  { %2987 = vmatpush3.msra.mxu0 %v4069_v16 }
 0x5ee   :  { %2989 = vmatmul.mubr.msk.f32.vlgmr.msra.gmra.mxu0 %vm999_vm1, %v3997_v8  ;;  %3016 = vmatprep.subr.mxu0 %v4263_v21 }
 0x5ef   :  { %2991 = vmatprep.mubr.msk.f32.mxu0 %vm999_vm1, %v4004_v9 }
 0x5f2   :  { %2992 = vmatmul.mubr.msk.f32.gmra.mxu0 %vm999_vm1, %v4011_v24 }
 0x5f3   :  { %2994 = vmatprep.mubr.msk.f32.mxu0 %vm999_vm1, %v4018_v46 }
 0x5f6   :  { %2995 = vmatmul.mubr.msk.f32.gmra.mxu0 %vm999_vm1, %v4025_v10 }
 0x5f7   :  { %2997 = vmatprep.mubr.msk.f32.mxu0 %vm999_vm1, %v4032_v4 }
 0x5fa   :  { %2998 = vmatmul.mubr.msk.f32.gmra.mxu0 %vm999_vm1, %v4090_v42 }
 0x5fb   :  { %3048 = vmatprep.mubr.msk.f32.mxu0 %vm3261_vm2, %v4263_v21 }
 0x6ae   :  { %v2990_v48 = vpop.f32.mrf.mxu0 }
 0x6af   :  { %v2024_v54 = vadd.f32 %v2990_v48, %v856_v44 }
 0x6b0   :  { %v1984_v45 = vpop.f32.mrf.mxu0 }
 0x6b1   :  { %v2032_v3 = vmul.f32 0.5, %v2024_v54  ;;  %v2023_v20 = vadd.f32 %v1984_v45, %v851_v2 }
 0x6b2   :  { %v2993_v52 = vpop.f32.mrf.mxu0 }
 0x6b3   :  { %3183 = vtanh.f32 %v2032_v3  ;;  %v2031_v14 = vmul.f32 0.5, %v2023_v20  ;;  %v2026_v60 = vadd.f32 %v2993_v52, %v866_v40 }
 0x6b4   :  { %v1994_v5 = vpop.f32.mrf.mxu0 }
 0x6b5   :  { %3185 = vtanh.f32 %v2031_v14  ;;  %v2040_v59 = vmul.f32 0.5, %v2026_v60  ;;  %v2025_v61 = vadd.f32 %v1994_v5, %v861_v11 }
 0x6b6   :  { %v2996_v50 = vpop.f32.mrf.mxu0 }
 0x6b7   :  { %3187 = vtanh.f32 %v2040_v59  ;;  %v2039_v13 = vmul.f32 0.5, %v2025_v61  ;;  %v2028_v28 = vadd.f32 %v2996_v50, %v876_v55 }
 0x6b8   :  { %v2004_v56 = vpop.f32.mrf.mxu0 }
 0x6b9   :  { %3189 = vtanh.f32 %v2039_v13  ;;  %v2027_v51 = vadd.f32 %v2004_v56, %v871_v30 }
 0x6ba   :  { %3191 = vtanh.f32 %v2028_v28  ;;  %v2999_v25 = vpop.f32.mrf.mxu0 }
 0x6bb   :  { %3193 = vtanh.f32 %v2027_v51  ;;  %v2030_v7 = vadd.f32 %v2999_v25, %v886_v37  ;;  %v4273_v37 = vld [vmem:[#allocation27_spill] sm:$0xff] }
 0x6bc   :  { %v2014_v63 = vpop.f32.mrf.mxu0 }
 0x6bd   :  { %v2029_v1 = vadd.f32 %v2014_v63, %v881_v39  ;;  %v2050_v44 = vmul.f32 0.5, %v2030_v7 }
 0x6bf   :  { %v2049_v54 = vmul.f32 0.5, %v2029_v1  ;;  %3195 = vtanh.f32 %v2050_v44 }
 0x6c0   :  { %v3184_v43 = vpop.eup %3183 }
 0x6c1   :  { %v2036_v53 = vadd.f32 1.0, %v3184_v43  ;;  %3197 = vtanh.f32 %v2049_v54 }
 0x6c2   :  { %v3186_v48 = vpop.eup %3185 }
 0x6c3   :  { %v2035_v2 = vadd.f32 1.0, %v3186_v48  ;;  %v2038_v3 = vmul.f32 0.5, %v2036_v53 }
 0x6c4   :  { %v3188_v45 = vpop.eup %3187 }
 0x6c5   :  { %v2044_v18 = vadd.f32 1.0, %v3188_v45  ;;  %v2037_v52 = vmul.f32 0.5, %v2035_v2 }
 0x6c6   :  { %v3190_v40 = vpop.eup %3189 }
 0x6c7   :  { %v3192_v20 = vpop.eup %3191  ;;  %v2046_v15 = vmul.f32 0.5, %v2044_v18  ;;  %v2043_v11 = vadd.f32 1.0, %v3190_v40  ;;  %v4277_v18 = vld [vmem:[#allocation31_spill] sm:$0xff] }
 0x6c8   :  { %v3194_v14 = vpop.eup %3193  ;;  %v2060_v60 = vmul.f32 %v3192_v20, %v2038_v3 }
 0x6c9   :  { %v2058_v5 = vmul.f32 %v2046_v15, %v4060_v62  ;;  %v2045_v12 = vmul.f32 0.5, %v2043_v11  ;;  %v2059_v55 = vmul.f32 %v3194_v14, %v2037_v52  ;;  %v4278_v15 = vld [vmem:[#allocation32_spill] sm:$0xff]  ;;  %v4279_v14 = vld [vmem:[#allocation33_spill] sm:$0xff] }
 0x6ca   :  { %v996_v11 = vadd.f32 %v4278_v15, %v3742_v29 }
 0x6cb   :  { %v2057_v59 = vmul.f32 %v2045_v12, %v4062_v32  ;;  %v4112_v61 = vadd.f32 %v2060_v60, %v2058_v5  ;;  %v991_v60 = vadd.f32 %v4279_v14, %v3745_v36 }
 0x6cc   :  { %v3196_v58 = vpop.eup %3195 }
 0x6cd   :  { %v4114_v50 = vadd.f32 %v2059_v55, %v2057_v59  ;;  %3199 = vtanh.f32 %v4112_v61  ;;  %v2054_v13 = vadd.f32 1.0, %v3196_v58 }
 0x6ce   :  { %v3198_v30 = vpop.eup %3197 }
 0x6cf   :  { %3201 = vtanh.f32 %v4114_v50  ;;  %v2053_v28 = vadd.f32 1.0, %v3198_v30  ;;  %v2056_v56 = vmul.f32 0.5, %v2054_v13 }
 0x6d1   :  { %v2055_v25 = vmul.f32 0.5, %v2053_v28 }
 0x6da   :  { %v3200_v51 = vpop.eup %3199 }
 0x6db   :  { %v4118_v62 = vmul.f32 %v3200_v51, %v2056_v56 }
 0x6dc   :  { %v3202_v6 = vpop.eup %3201 }
 0x6dd   :  { %3000 = vmatprep.subr.mxu1 %v4118_v62  ;;  %v4121_v32 = vmul.f32 %v3202_v6, %v2055_v25 }
 0x6de   :  { %3001 = vmatpush3.msra.mxu1 %v4118_v62 }
 0x6df   :  { %3002 = vmatprep.subr.mxu1 %v4121_v32 }
 0x6e0   :  { %3003 = vmatpush3.msra.mxu1 %v4121_v32 }
 0x6e1   :  { %3005 = vmatmul.mubr.msk.f32.vlgmr.msra.gmra.mxu1 %vm999_vm1, %v3997_v8  ;;  %v4272_v8 = vld [vmem:[#allocation26_spill] sm:$0xff] }
 0x6e2   :  { %3007 = vmatprep.mubr.msk.f32.mxu1 %vm999_vm1, %v4004_v9  ;;  %v966_v9 = vadd.f32 %v4272_v8, %v3718_v23  ;;  %v4276_v23 = vld [vmem:[#allocation30_spill] sm:$0xff] }
 0x6e3   :  { %v986_v2 = vadd.f32 %v4276_v23, %v3736_v47 }
 0x6e5   :  { %3008 = vmatmul.mubr.msk.f32.gmra.mxu1 %vm999_vm1, %v4011_v24 }
 0x6e6   :  { %3010 = vmatprep.mubr.msk.f32.mxu1 %vm999_vm1, %v4018_v46  ;;  %v961_v46 = vadd.f32 %v4273_v37, %v3722_v26 }
 0x6e9   :  { %3011 = vmatmul.mubr.msk.f32.gmra.mxu1 %vm999_vm1, %v4025_v10  ;;  %v4274_v10 = vld [vmem:[#allocation28_spill] sm:$0xff] }
 0x6ea   :  { %3013 = vmatprep.mubr.msk.f32.mxu1 %vm999_vm1, %v4032_v4  ;;  %v976_v39 = vadd.f32 %v4274_v10, %v3729_v31  ;;  %v981_v31 = vadd.f32 %v4277_v18, %v3739_v57 }
 0x6ed   :  { %3014 = vmatmul.mubr.msk.f32.gmra.mxu1 %vm999_vm1, %v4090_v42  ;;  %v4275_v42 = vld [vmem:[#allocation29_spill] sm:$0xff] }
 0x6ee   :  { %v971_v43 = vadd.f32 %v4275_v42, %v3732_v35 }
 0x7a1   :  { %v3006_v24 = vpop.f32.mrf.mxu1 }
 0x7a2   :  { %v2173_v63 = vadd.f32 %v3006_v24, %v966_v9 }
 0x7a3   :  { %v2133_v0 = vpop.f32.mrf.mxu1 }
 0x7a4   :  { %v2181_v4 = vmul.f32 0.5, %v2173_v63  ;;  %v2172_v7 = vadd.f32 %v2133_v0, %v961_v46 }
 0x7a5   :  { %v3009_v1 = vpop.f32.mrf.mxu1 }
 0x7a6   :  { %3203 = vtanh.f32 %v2181_v4  ;;  %v2180_v44 = vmul.f32 0.5, %v2172_v7  ;;  %v2175_v48 = vadd.f32 %v3009_v1, %v976_v39 }
 0x7a7   :  { %v2143_v53 = vpop.f32.mrf.mxu1 }
 0x7a8   :  { %3205 = vtanh.f32 %v2180_v44  ;;  %v2189_v26 = vmul.f32 0.5, %v2175_v48  ;;  %v2174_v54 = vadd.f32 %v2143_v53, %v971_v43 }
 0x7a9   :  { %v3012_v45 = vpop.f32.mrf.mxu1 }
 0x7aa   :  { %3207 = vtanh.f32 %v2189_v26  ;;  %v2188_v40 = vmul.f32 0.5, %v2174_v54  ;;  %v2177_v3 = vadd.f32 %v3012_v45, %v986_v2 }
 0x7ab   :  { %v2153_v20 = vpop.f32.mrf.mxu1 }
 0x7ac   :  { %3209 = vtanh.f32 %v2188_v40  ;;  %v2176_v35 = vadd.f32 %v2153_v20, %v981_v31 }
 0x7ad   :  { %3211 = vtanh.f32 %v2177_v3  ;;  %v3015_v52 = vpop.f32.mrf.mxu1 }
 0x7ae   :  { %3213 = vtanh.f32 %v2176_v35  ;;  %v2179_v5 = vadd.f32 %v3015_v52, %v996_v11 }
 0x7af   :  { %v2163_v47 = vpop.f32.mrf.mxu1 }
 0x7b0   :  { %v2178_v12 = vadd.f32 %v2163_v47, %v991_v60  ;;  %v2199_v57 = vmul.f32 0.5, %v2179_v5 }
 0x7b2   :  { %v2198_v13 = vmul.f32 0.5, %v2178_v12  ;;  %3215 = vtanh.f32 %v2199_v57 }
 0x7b3   :  { %v3204_v55 = vpop.eup %3203 }
 0x7b4   :  { %v2185_v58 = vadd.f32 1.0, %v3204_v55  ;;  %3217 = vtanh.f32 %v2198_v13 }
 0x7b5   :  { %v3206_v59 = vpop.eup %3205 }
 0x7b6   :  { %v2184_v30 = vadd.f32 1.0, %v3206_v59  ;;  %v2187_v25 = vmul.f32 0.5, %v2185_v58 }
 0x7b7   :  { %v3208_v28 = vpop.eup %3207 }
 0x7b8   :  { %v2193_v56 = vadd.f32 1.0, %v3208_v28  ;;  %v2186_v29 = vmul.f32 0.5, %v2184_v30 }
 0x7b9   :  { %v3210_v51 = vpop.eup %3209 }
 0x7ba   :  { %v3212_v6 = vpop.eup %3211  ;;  %v2195_v8 = vmul.f32 0.5, %v2193_v56  ;;  %v2192_v9 = vadd.f32 1.0, %v3210_v51 }
 0x7bb   :  { %v3214_v24 = vpop.eup %3213  ;;  %v2209_v36 = vmul.f32 %v3212_v6, %v2187_v25 }
 0x7bc   :  { %v2207_v37 = vmul.f32 %v2195_v8, %v4112_v61  ;;  %v2194_v46 = vmul.f32 0.5, %v2192_v9  ;;  %v2208_v63 = vmul.f32 %v3214_v24, %v2186_v29  ;;  %v2230_v61 = vpop.permute.xlu1 %2229  ;;  %v2363_v9 = vstv %s4219_s7 }
 0x7be   :  { %v2206_v0 = vmul.f32 %v2194_v46, %v4114_v50  ;;  %v2211_v10 = vadd.f32 %v2209_v36, %v2207_v37 }
 0x7bf   :  { %v3216_v4 = vpop.eup %3215 }
 0x7c0   :  { %3219 = vtanh.f32 %v2211_v10  ;;  %v2210_v39 = vadd.f32 %v2208_v63, %v2206_v0  ;;  %v2203_v1 = vadd.f32 1.0, %v3216_v4  ;;  %v2335_v15 = vpop.permute.xlu1 %2334 }
 0x7c1   :  { %v3218_v7 = vpop.eup %3217 }
 0x7c2   :  { %3221 = vtanh.f32 %v2210_v39  ;;  %v2202_v42 = vadd.f32 1.0, %v3218_v7  ;;  %v2205_v43 = vmul.f32 0.5, %v2203_v1 }
 0x7c4   :  { %v2204_v48 = vmul.f32 0.5, %v2202_v42  ;;  %v2345_v59 = vpop.permute.xlu1 %2344 }
 0x7cd   :  { %v3220_v44 = vpop.eup %3219 }
 0x7ce   :  { %v2215_v53 = vmul.f32 %v3220_v44, %v2205_v43 }
 0x7cf   :  { %v3222_v23 = vpop.eup %3221 }
 0x7d0   :  { %3017 = vmatpush3.msra.mxu0 %v2215_v53  ;;  %v2214_v2 = vmul.f32 %v3222_v23, %v2204_v48 }
 0x7d1   :  { %3018 = vmatprep.subr.mxu0 %v4263_v21 }
 0x7d2   :  { %3019 = vmatpush3.msra.mxu0 %v2214_v2 }
 0x7d3   :  { %3020 = vmatprep.subr.mxu0 %v4263_v21 }
 0x7d4   :  { %3021 = vmatpush3.msra.mxu0 %v4118_v62 }
 0x7d5   :  { %3022 = vmatprep.subr.mxu0 %v4263_v21 }
 0x7d6   :  { %3023 = vmatpush3.msra.mxu0 %v4121_v32 }
 0x7d7   :  { %3024 = vmatprep.subr.mxu0 %v4263_v21 }
 0x7d8   :  { %3025 = vmatpush3.msra.mxu0 %v4066_v49 }
 0x7d9   :  { %3026 = vmatprep.subr.mxu0 %v4263_v21 }
 0x7da   :  { %3027 = vmatpush3.msra.mxu0 %v4069_v16 }
 0x7db   :  { %3028 = vmatprep.subr.mxu0 %v4263_v21 }
 0x7dc   :  { %3029 = vmatpush3.msra.mxu0 %v3986_v27 }
 0x7dd   :  { %3030 = vmatprep.subr.mxu0 %v4263_v21 }
 0x7de   :  { %3031 = vmatpush3.msra.mxu0 %v3989_v34 }
 0x7df   :  { %3032 = vmatprep.subr.mxu0 %v4263_v21 }
 0x7e0   :  { %3033 = vmatpush3.msra.mxu0 %v3938_v17  ;;  %v4280_v17 = vld [vmem:[#allocation16_spill] sm:$0xff] }
 0x7e1   :  { %3034 = vmatprep.subr.mxu0 %v4263_v21 }
 0x7e2   :  { %3035 = vmatpush3.msra.mxu0 %v3941_v33  ;;  %v4281_v33 = vld [vmem:[#allocation17_spill] sm:$0xff] }
 0x7e3   :  { %3036 = vmatprep.subr.mxu0 %v4263_v21 }
 0x7e4   :  { %3037 = vmatpush3.msra.mxu0 %v3890_v19  ;;  %v2216_v19 = vld [vmem:[%s4216_s4] sm:$0xff] }
 0x7e5   :  { %3038 = vmatprep.subr.mxu0 %v4263_v21 }
 0x7e6   :  { %3039 = vmatpush3.msra.mxu0 %v3893_v22  ;;  %v2225_v22 = vpop.permute.xlu0 %2224 }
 0x7e7   :  { %3040 = vmatprep.subr.mxu0 %v4263_v21 }
 0x7e8   :  { %3041 = vmatpush3.msra.mxu0 %v3842_v38  ;;  %v2217_v38 = vld [vmem:[%s4216_s4 + $0x8] sm:$0xff] }
 0x7e9   :  { %3042 = vmatprep.subr.mxu0 %v4263_v21 }
 0x7ea   :  { %3043 = vmatpush3.msra.mxu0 %v3845_v41  ;;  %v2218_v41 = vld [vmem:[%s4216_s4 + $0x10] sm:$0x1]  ;;  %v2235_v54 = vpop.permute.xlu0 %2234 }
 0x7eb   :  { %3044 = vmatprep.subr.mxu0 %v4263_v21 }
 0x7ec   :  { %3045 = vmatpush3.msra.mxu0 %v4280_v17 }
 0x7ed   :  { %3046 = vmatprep.subr.mxu0 %v4263_v21 }
 0x7ee   :  { %3047 = vmatpush3.msra.mxu0 %v4281_v33  ;;  %v2340_v14 = vpop.permute.xlu0 %2339 }
 0x7ef   :  { %3049 = vmatmul.mubr.f32.vlgmr.msra.gmra.mxu0 %v2216_v19 }
 0x7f0   :  { %3051 = vmatprep.mubr.msk.f32.mxu0 %vm3261_vm2, %v4263_v21 }
 0x7f3   :  { %3052 = vmatmul.mubr.f32.gmra.mxu0 %v2217_v38 }
 0x7f4   :  { %3054 = vmatprep.mubr.msk.f32.mxu0 %vm3261_vm2, %v4263_v21 }
 0x7f7   :  { %3055 = vmatmul.mubr.f32.gmra.mxu0 %v2218_v41 }
 0x8af   :  { %v2303_v27 = vpop.f32.mrf.mxu0 }
 0x8b0   :  { %v2304_v34 = vadd.f32 %v2303_v27, %v2225_v22 }
 0x8b1   :  { %v3050_v49 = vpop.f32.mrf.mxu0 }
 0x8b2   :  { %v2317_v16 = vmul.f32 0.5, %v2304_v34 }
 0x8b3   :  { %v2308_v50 = vpop.f32.mrf.mxu0 }
 0x8b4   :  { %3223 = vtanh.f32 %v2317_v16  ;;  %v2309_v62 = vadd.f32 %v2308_v50, %v2230_v61 }
 0x8b5   :  { %v3053_v32 = vpop.f32.mrf.mxu0 }
 0x8b6   :  { %v2318_v26 = vmul.f32 0.5, %v2309_v62 }
 0x8b7   :  { %v2313_v45 = vpop.f32.mrf.mxu0 }
 0x8b8   :  { %3225 = vtanh.f32 %v2318_v26  ;;  %v2314_v21 = vadd.f32 %v2313_v45, %v2235_v54 }
 0x8b9   :  { %v3056_v18 = vpop.f32.mrf.mxu0 }
 0x8ba   :  { %v2319_v31 = vmul.f32 0.5, %v2314_v21 }
 0x8bc   :  { %3227 = vtanh.f32 %v2319_v31 }
 0x8c1   :  { %v3224_v40 = vpop.eup %3223 }
 0x8c2   :  { %v2323_v3 = vadd.f32 1.0, %v3224_v40 }
 0x8c4   :  { %v2326_v35 = vmul.f32 0.5, %v2323_v3 }
 0x8c5   :  { %v3226_v20 = vpop.eup %3225 }
 0x8c6   :  { %v2324_v52 = vadd.f32 1.0, %v3226_v20  ;;  %v2347_v60 = vmul.f32 %v2335_v15, %v2326_v35 }
 0x8c8   :  { %v2327_v11 = vmul.f32 0.5, %v2324_v52  ;;  %v2350_v30 = vsel %vm999_vm1, %v2347_v60, 0.0 }
 0x8c9   :  { %v3228_v47 = vpop.eup %3227 }
 0x8ca   :  { %v2348_v5 = vmul.f32 %v2340_v14, %v2327_v11  ;;  %v2325_v12 = vadd.f32 1.0, %v3228_v47 }
 0x8cc   :  { %v2328_v55 = vmul.f32 0.5, %v2325_v12  ;;  %v2351_v57 = vsel %vm999_vm1, %v2348_v5, 0.0 }
 0x8cd   :  { %v2352_v13 = vadd.f32 %v2351_v57, %v2350_v30 }
 0x8ce   :  { %v2349_v58 = vmul.f32 %v2345_v59, %v2328_v55 }
 0x8d0   :  { %v2354_v28 = vsel %vm2353_vm3, %v2349_v58, 0.0 }
 0x8d1   :  { %v2355_v56 = vadd.f32 %v2354_v28, %v2352_v13 }
 0x8d3   :  { %v2356_v51 = vrot.slane %v2355_v56, 4 }
 0x8d5   :  { %v2357_v25 = vadd.f32 %v2356_v51, %v2355_v56 }
 0x8d7   :  { %v2358_v6 = vrot.slane %v2357_v25, 2 }
 0x8d9   :  { %v2359_v29 = vadd.f32 %v2358_v6, %v2357_v25 }
 0x8db   :  { %v2360_v8 = vrot.slane %v2359_v29, 1 }
 0x8dd   :  { %v2361_v24 = vadd.f32 %v2360_v8, %v2359_v29 }
 0x8df   :  { %v2364_v36 = vadd.f32 %v2363_v9, %v2361_v24 }
 0x8e1   :  { %2365 = vst.msk [vmem:[#allocation3] sm:$0x1] %vm2353_vm3, %v2364_v36 }
 0x8e2   :  { %3248 = shalt.err (!%p3245_p4)
}
 0x8e3   :  { %2375 = dma.vmem_to_hbm [thread:$0]  %s2373_s9, 16, %s4220_s8, [#allocation4]  }
 0x8e4   :  { %3257 = dma.done.wait [#allocation4], 16  }
 0x8e5   :  { %3258 = vsyncadd [#allocation4], 4294967280 }
 0x8e6   :  { %2379 = vsyncpa [#allocation4], 1 }

</bundles_post_ra>
